<compile_context>
chip_gen: v7x
topology: tpu7x:2x2x1
jax: 0.10.0
libtpu: 0.0.40
codegen_flags: <defaults>
</compile_context>

<pallas_src>
import functools

import jax
import jax.numpy as jnp
from jax.experimental import pallas as pl
from jax.experimental.pallas import tpu as pltpu


# -----------------------------------------------------------------------------
# Fused kernel: hoisted input projection + sequential LSTM recurrence per block
# -----------------------------------------------------------------------------
def _lstm_fused_kernel(x_ref, wih_ref, whh_ref, b_ref, h0_ref, c0_ref,
                       y_ref, hN_ref, cN_ref, xp_sc, h_sc, c_sc):
    """One grid step == one (batch-block, time-block) tile of the LSTM.

    x_ref  : (BB, TT, I)  bf16  batch-first input tile
    wih_ref: (I, 4H)      bf16  W_ih^T, grid-invariant (resident)
    whh_ref: (H, 4H)      bf16  W_hh^T, grid-invariant (resident)
    b_ref  : (1, 4H)      f32   fused bias (b_ih + b_hh), resident
    h0_ref : (1, BB, H)   f32   initial hidden state for this batch block
    c0_ref : (1, BB, H)   f32   initial cell   state for this batch block
    y_ref  : (BB, TT, H)        batch-first output tile
    hN/cN  : (1, BB, H)         final state (written on the last time block)
    xp_sc  : (BB, TT, 4H) f32   VMEM scratch: hoisted input projection
    h_sc/c_sc : (BB, H)   f32   VMEM scratch carrying the recurrent state
    """
    tb = pl.program_id(1)
    Bb, TT, I = x_ref.shape
    H = h_sc.shape[-1]
    G = 4 * H

    @pl.when(tb == 0)
    def _():
        h_sc[...] = h0_ref[0].astype(jnp.float32)
        c_sc[...] = c0_ref[0].astype(jnp.float32)

    wih = wih_ref[...]        # (I, 4H) bf16
    whh = whh_ref[...]        # (H, 4H) bf16
    bias = b_ref[...]         # (1, 4H) f32

    # ---- Hoisted input projection for the whole time block (one MXU matmul) ----
    if TT % 8 == 0:
        # Collapse (BB, TT) -> rows; layout-preserving because TT is a multiple of
        # the 8-sublane tile.
        x2 = x_ref[...].reshape(Bb * TT, I)
        xp = jnp.dot(x2, wih, preferred_element_type=jnp.float32) + bias
        xp_sc[...] = xp.reshape(Bb, TT, G)
    else:
        # Fallback for awkward time blocks: per-batch-row matmuls (no reshape).
        for b in range(Bb):
            xp_sc[b] = jnp.dot(x_ref[b], wih,
                               preferred_element_type=jnp.float32) + bias

    # ---- Sequential recurrence: fully unrolled static loop over TT steps -------
    for i in range(TT):
        # Only ONE matmul per step remains on the serial path (bf16 in, f32 acc).
        gates = xp_sc[:, i, :] + jnp.dot(
            h_sc[...].astype(jnp.bfloat16), whh,
            preferred_element_type=jnp.float32)            # (BB, 4H) f32

        # PyTorch LSTM gate order: i, f, g, o
        i_g = jax.nn.sigmoid(gates[:, 0 * H:1 * H])
        f_g = jax.nn.sigmoid(gates[:, 1 * H:2 * H])
        g_g = jnp.tanh(gates[:, 2 * H:3 * H])
        o_g = jax.nn.sigmoid(gates[:, 3 * H:4 * H])

        c_new = f_g * c_sc[...] + i_g * g_g
        h_new = o_g * jnp.tanh(c_new)

        c_sc[...] = c_new
        h_sc[...] = h_new
        y_ref[:, i, :] = h_new.astype(y_ref.dtype)         # batch-first store

    @pl.when(tb == pl.num_programs(1) - 1)
    def _():
        hN_ref[0] = h_sc[...].astype(hN_ref.dtype)
        cN_ref[0] = c_sc[...].astype(cN_ref.dtype)


# -----------------------------------------------------------------------------
# Wrapper
# -----------------------------------------------------------------------------
def _pick_time_block(T):
    for tt in (32, 16, 8):
        if T % tt == 0:
            return tt
    return T  # whole sequence in one grid step (small/odd T)


def _default_batch_blocks(B):
    # v7x has 2 TensorCores per chip -> split the batch across them.
    try:
        kind = jax.devices()[0].device_kind.lower()
    except Exception:
        kind = ""
    if "v7" in kind and B % 2 == 0:
        return 2
    return 1


@functools.partial(jax.jit, static_argnames=("time_block", "batch_blocks"))
def rnn_forward(x, w_ih, w_hh, b_ih, b_hh, h0=None, c0=None, *,
                time_block=None, batch_blocks=None):
    """Mirrors RNN.forward: x is batch_first (B, T, I). Returns (y, (h, c))."""
    assert not ((h0 is None) ^ (c0 is None))
    B, T, I = x.shape
    H = w_hh.shape[1]
    G = 4 * H

    TT = time_block if time_block is not None else _pick_time_block(T)
    NB = batch_blocks if batch_blocks is not None else _default_batch_blocks(B)
    assert T % TT == 0, "time_block must divide T"
    assert B % NB == 0, "batch_blocks must divide B"
    BB = B // NB

    # bf16 matmul operands (MXU-native on v5e/v6e/v7x), f32 accumulation everywhere.
    x_bf = x.astype(jnp.bfloat16)
    wih_t = w_ih.T.astype(jnp.bfloat16)                    # (I, 4H)
    whh_t = w_hh.T.astype(jnp.bfloat16)                    # (H, 4H)
    bias = (b_ih + b_hh).astype(jnp.float32).reshape(1, G)

    if h0 is None:
        h0 = jnp.zeros((1, B, H), jnp.float32)
        c0 = jnp.zeros((1, B, H), jnp.float32)
    h0_r = h0[0].astype(jnp.float32).reshape(NB, BB, H)
    c0_r = c0[0].astype(jnp.float32).reshape(NB, BB, H)

    y, h_n, c_n = pl.pallas_call(
        _lstm_fused_kernel,
        out_shape=(
            jax.ShapeDtypeStruct((B, T, H), x.dtype),
            jax.ShapeDtypeStruct((NB, BB, H), x.dtype),
            jax.ShapeDtypeStruct((NB, BB, H), x.dtype),
        ),
        grid_spec=pltpu.PrefetchScalarGridSpec(
            num_scalar_prefetch=0,
            grid=(NB, T // TT),
            in_specs=[
                pl.BlockSpec((BB, TT, I), lambda b, tb: (b, tb, 0)),   # x (batch-first)
                pl.BlockSpec((I, G), lambda b, tb: (0, 0)),            # W_ih^T (resident)
                pl.BlockSpec((H, G), lambda b, tb: (0, 0)),            # W_hh^T (resident)
                pl.BlockSpec((1, G), lambda b, tb: (0, 0)),            # fused bias
                pl.BlockSpec((1, BB, H), lambda b, tb: (b, 0, 0)),     # h0
                pl.BlockSpec((1, BB, H), lambda b, tb: (b, 0, 0)),     # c0
            ],
            out_specs=[
                pl.BlockSpec((BB, TT, H), lambda b, tb: (b, tb, 0)),   # y (batch-first)
                pl.BlockSpec((1, BB, H), lambda b, tb: (b, 0, 0)),     # h_N
                pl.BlockSpec((1, BB, H), lambda b, tb: (b, 0, 0)),     # c_N
            ],
            scratch_shapes=[
                pltpu.VMEM((BB, TT, G), jnp.float32),                  # x-projection
                pltpu.VMEM((BB, H), jnp.float32),                      # h carry
                pltpu.VMEM((BB, H), jnp.float32),                      # c carry
            ],
        ),
        compiler_params=pltpu.CompilerParams(
            dimension_semantics=("parallel", "arbitrary")),            # time is sequential
    )(x_bf, wih_t, whh_t, bias, h0_r, c0_r)

    h_n = h_n.reshape(B, H)[None]
    c_n = c_n.reshape(B, H)[None]
    return y, (h_n, c_n)


# -----------------------------------------------------------------------------
# Init matching the module's __init__ post-processing
# -----------------------------------------------------------------------------
def init_params(key, inchan, outchan, init_scale=1.0):
    H = outchan
    k = 1.0 / jnp.sqrt(jnp.asarray(H, jnp.float32))
    k1, k2 = jax.random.split(key)
    w_ih = jax.random.uniform(k1, (4 * H, inchan), jnp.float32, -k, k)
    w_hh = jax.random.uniform(k2, (4 * H, H), jnp.float32, -k, k)
    # weight *= init_scale / ||row||_2  (per-row L2 normalization, keepdim)
    w_ih = w_ih * (init_scale / jnp.linalg.norm(w_ih, axis=1, keepdims=True))
    w_hh = w_hh * (init_scale / jnp.linalg.norm(w_hh, axis=1, keepdims=True))
    # biases (ndim == 1) are multiplied by 0 in __init__
    b_ih = jnp.zeros((4 * H,), jnp.float32)
    b_hh = jnp.zeros((4 * H,), jnp.float32)
    return w_ih, w_hh, b_ih, b_hh


# -----------------------------------------------------------------------------
# Pure-JAX reference (lax.scan); mm_dtype=bfloat16 mirrors the kernel numerics.
# -----------------------------------------------------------------------------
def _reference_lstm(x, w_ih, w_hh, b_ih, b_hh, mm_dtype=None):
    B, T, I = x.shape
    H = w_hh.shape[1]
    cast = (lambda a: a.astype(mm_dtype)) if mm_dtype is not None else (lambda a: a)
    wih_t = cast(w_ih).T
    whh_t = cast(w_hh).T
    bias = (b_ih + b_hh).astype(jnp.float32)
    xs = jnp.transpose(cast(x), (1, 0, 2))  # (T, B, I)

    def step(carry, x_t):
        h, c = carry
        gates = (jnp.dot(x_t, wih_t, preferred_element_type=jnp.float32)
                 + jnp.dot(cast(h), whh_t, preferred_element_type=jnp.float32)
                 + bias)
        i, f, g, o = jnp.split(gates, 4, axis=-1)
        c_new = jax.nn.sigmoid(f) * c + jax.nn.sigmoid(i) * jnp.tanh(g)
        h_new = jax.nn.sigmoid(o) * jnp.tanh(c_new)
        return (h_new, c_new), h_new

    h0 = jnp.zeros((B, H), jnp.float32)
    c0 = jnp.zeros((B, H), jnp.float32)
    (h_n, c_n), ys = jax.lax.scan(step, (h0, c0), xs)
    y = jnp.transpose(ys, (1, 0, 2)).astype(x.dtype)
    return y, (h_n[None].astype(x.dtype), c_n[None].astype(x.dtype))


if __name__ == "__main__":
    B, T, INCHAN, OUTCHAN = 2, 8, 16, 32

    key = jax.random.PRNGKey(0)
    k_x, k_w = jax.random.split(key)
    x = jax.random.normal(k_x, (B, T, INCHAN), jnp.float32)
    w_ih, w_hh, b_ih, b_hh = init_params(k_w, INCHAN, OUTCHAN, init_scale=1.0)

    # Default config (auto batch split on 2-TC chips, single batch block elsewhere).
    y, (h, c) = rnn_forward(x, w_ih, w_hh, b_ih, b_hh)
    jax.block_until_ready((y, h, c))

    # Explicitly exercise the batch-parallel (megacore) path as well.
    y2, (h2, c2) = rnn_forward(x, w_ih, w_hh, b_ih, b_hh, batch_blocks=2)
    jax.block_until_ready((y2, h2, c2))

    assert y.shape == (B, T, OUTCHAN)
    assert h.shape == (1, B, OUTCHAN) and c.shape == (1, B, OUTCHAN)

    # Tight check against a reference using the same bf16-matmul / f32-accum numerics.
    y_bf, (h_bf, c_bf) = _reference_lstm(x, w_ih, w_hh, b_ih, b_hh, mm_dtype=jnp.bfloat16)
    for got, ref in ((y, y_bf), (h, h_bf), (c, c_bf)):
        assert jnp.allclose(got, ref, rtol=1e-3, atol=1e-3), "mismatch vs bf16-matched reference"
    for got, ref in ((y2, y_bf), (h2, h_bf), (c2, c_bf)):
        assert jnp.allclose(got, ref, rtol=1e-3, atol=1e-3), "batch-parallel path mismatch"

    # Loose check against the exact-f32 reference (bf16 matmul inputs are an
    # intentional perf choice; f32 carries keep the drift small).
    y_f32, (h_f32, c_f32) = _reference_lstm(x, w_ih, w_hh, b_ih, b_hh, mm_dtype=None)
    for got, ref in ((y, y_f32), (h, h_f32), (c, c_f32)):
        assert jnp.allclose(got, ref, rtol=5e-2, atol=5e-2), "mismatch vs f32 reference"

    print("KERNEL_OK")
</pallas_src>

<mosaic_0001>
module attributes {stable_mosaic.version = 11 : i64} {
  func.func @_lstm_fused_kernel(%arg0: i32, %arg1: i32, %arg2: memref<2x8x16xbf16, #tpu.memory_space<vmem>>, %arg3: memref<16x128xbf16, #tpu.memory_space<vmem>>, %arg4: memref<32x128xbf16, #tpu.memory_space<vmem>>, %arg5: memref<1x128xf32, #tpu.memory_space<vmem>>, %arg6: memref<1x2x32xf32, #tpu.memory_space<vmem>>, %arg7: memref<1x2x32xf32, #tpu.memory_space<vmem>>, %arg8: memref<2x8x32xf32, #tpu.memory_space<vmem>>, %arg9: memref<1x2x32xf32, #tpu.memory_space<vmem>>, %arg10: memref<1x2x32xf32, #tpu.memory_space<vmem>>, %arg11: memref<2x8x128xf32, #tpu.memory_space<vmem>>, %arg12: memref<2x32xf32, #tpu.memory_space<vmem>>, %arg13: memref<2x32xf32, #tpu.memory_space<vmem>>) attributes {dimension_semantics = [#tpu.dimension_semantics<parallel>, #tpu.dimension_semantics<arbitrary>], iteration_bounds = array<i64: 1, 1>, scalar_prefetch = 0 : i64, scratch_operands = 3 : i64, tpu.core_type = #tpu.core_type<tc>, window_params = [{transform_indices = @transform_0, window_bounds = array<i64: 2, 8, 16>}, {pipeline_mode = #tpu.pipeline_mode<synchronous>, transform_indices = @transform_1, window_bounds = array<i64: 16, 128>}, {pipeline_mode = #tpu.pipeline_mode<synchronous>, transform_indices = @transform_2, window_bounds = array<i64: 32, 128>}, {pipeline_mode = #tpu.pipeline_mode<synchronous>, transform_indices = @transform_3, window_bounds = array<i64: 1, 128>}, {transform_indices = @transform_4, window_bounds = array<i64: 1, 2, 32>}, {transform_indices = @transform_5, window_bounds = array<i64: 1, 2, 32>}, {transform_indices = @transform_6, window_bounds = array<i64: 2, 8, 32>}, {transform_indices = @transform_7, window_bounds = array<i64: 1, 2, 32>}, {transform_indices = @transform_8, window_bounds = array<i64: 1, 2, 32>}]} {
    %c0_i32 = arith.constant 0 : i32
    %0 = arith.cmpi eq, %arg1, %c0_i32 : i32
    %1 = arith.extui %0 : i1 to i32
    %c0_i32_0 = arith.constant 0 : i32
    %2 = arith.cmpi ne, %1, %c0_i32_0 : i32
    scf.if %2 {
      %c0_151 = arith.constant 0 : index
      %c0_152 = arith.constant 0 : index
      %c0_153 = arith.constant 0 : index
      %312 = vector.load %arg6[%c0_151, %c0_152, %c0_153] : memref<1x2x32xf32, #tpu.memory_space<vmem>>, vector<1x2x32xf32>
      %313 = vector.shape_cast %312 : vector<1x2x32xf32> to vector<2x32xf32>
      %c0_154 = arith.constant 0 : index
      %c0_155 = arith.constant 0 : index
      %314 = vector.load %arg12[%c0_154, %c0_155] : memref<2x32xf32, #tpu.memory_space<vmem>>, vector<2x32xf32>
      tpu.vector_store %arg12[%c0_154, %c0_155], %313 {strides = array<i32>} : memref<2x32xf32, #tpu.memory_space<vmem>>, vector<2x32xf32>,
      %c0_156 = arith.constant 0 : index
      %c0_157 = arith.constant 0 : index
      %c0_158 = arith.constant 0 : index
      %315 = vector.load %arg7[%c0_156, %c0_157, %c0_158] : memref<1x2x32xf32, #tpu.memory_space<vmem>>, vector<1x2x32xf32>
      %316 = vector.shape_cast %315 : vector<1x2x32xf32> to vector<2x32xf32>
      %c0_159 = arith.constant 0 : index
      %c0_160 = arith.constant 0 : index
      %317 = vector.load %arg13[%c0_159, %c0_160] : memref<2x32xf32, #tpu.memory_space<vmem>>, vector<2x32xf32>
      tpu.vector_store %arg13[%c0_159, %c0_160], %316 {strides = array<i32>} : memref<2x32xf32, #tpu.memory_space<vmem>>, vector<2x32xf32>,
    } else {
    }
    %c0 = arith.constant 0 : index
    %c0_1 = arith.constant 0 : index
    %3 = vector.load %arg3[%c0, %c0_1] : memref<16x128xbf16, #tpu.memory_space<vmem>>, vector<16x128xbf16>
    %c0_2 = arith.constant 0 : index
    %c0_3 = arith.constant 0 : index
    %4 = vector.load %arg4[%c0_2, %c0_3] : memref<32x128xbf16, #tpu.memory_space<vmem>>, vector<32x128xbf16>
    %c0_4 = arith.constant 0 : index
    %c0_5 = arith.constant 0 : index
    %5 = vector.load %arg5[%c0_4, %c0_5] : memref<1x128xf32, #tpu.memory_space<vmem>>, vector<1x128xf32>
    %c0_6 = arith.constant 0 : index
    %c0_7 = arith.constant 0 : index
    %c0_8 = arith.constant 0 : index
    %6 = vector.load %arg2[%c0_6, %c0_7, %c0_8] : memref<2x8x16xbf16, #tpu.memory_space<vmem>>, vector<2x8x16xbf16>
    %7 = vector.shape_cast %6 : vector<2x8x16xbf16> to vector<16x16xbf16>
    %cst = arith.constant dense<0.000000e+00> : vector<16x128xf32>
    %8 = tpu.matmul %7, %3, %cst {dimension_numbers = #tpu.dot_dimension_numbers<[1], [0], [0], [1], [0, 0, 1, 1], [], []>} : vector<16x16xbf16>, vector<16x128xbf16>, vector<16x128xf32> -> vector<16x128xf32>
    %9 = vector.broadcast %5 : vector<1x128xf32> to vector<16x128xf32>
    %10 = arith.addf %8, %9 : vector<16x128xf32>
    %11 = vector.shape_cast %10 : vector<16x128xf32> to vector<2x8x128xf32>
    %c0_9 = arith.constant 0 : index
    %c0_10 = arith.constant 0 : index
    %c0_11 = arith.constant 0 : index
    %12 = vector.load %arg11[%c0_9, %c0_10, %c0_11] : memref<2x8x128xf32, #tpu.memory_space<vmem>>, vector<2x8x128xf32>
    tpu.vector_store %arg11[%c0_9, %c0_10, %c0_11], %11 {strides = array<i32>} : memref<2x8x128xf32, #tpu.memory_space<vmem>>, vector<2x8x128xf32>,
    %c0_12 = arith.constant 0 : index
    %c0_13 = arith.constant 0 : index
    %c0_14 = arith.constant 0 : index
    %13 = vector.load %arg11[%c0_12, %c0_13, %c0_14] : memref<2x8x128xf32, #tpu.memory_space<vmem>>, vector<2x1x128xf32>
    %14 = vector.shape_cast %13 : vector<2x1x128xf32> to vector<2x128xf32>
    %c0_15 = arith.constant 0 : index
    %c0_16 = arith.constant 0 : index
    %15 = vector.load %arg12[%c0_15, %c0_16] : memref<2x32xf32, #tpu.memory_space<vmem>>, vector<2x32xf32>
    %16 = arith.truncf %15 : vector<2x32xf32> to vector<2x32xbf16>
    %cst_17 = arith.constant dense<0.000000e+00> : vector<2x128xf32>
    %17 = tpu.matmul %16, %4, %cst_17 {dimension_numbers = #tpu.dot_dimension_numbers<[1], [0], [0], [1], [0, 0, 1, 1], [], []>} : vector<2x32xbf16>, vector<32x128xbf16>, vector<2x128xf32> -> vector<2x128xf32>
    %18 = arith.addf %14, %17 : vector<2x128xf32>
    %19 = vector.extract_strided_slice %18 {offsets = [0, 0], sizes = [2, 32], strides = [1, 1]} : vector<2x128xf32> to vector<2x32xf32>
    %20 = arith.negf %19 : vector<2x32xf32>
    %21 = math.exp %20 : vector<2x32xf32>
    %cst_18 = arith.constant 1.000000e+00 : f32
    %22 = vector.broadcast %cst_18 : f32 to vector<2x32xf32>
    %23 = arith.addf %22, %21 : vector<2x32xf32>
    %24 = arith.divf %22, %23 : vector<2x32xf32>
    %25 = vector.extract_strided_slice %18 {offsets = [0, 32], sizes = [2, 32], strides = [1, 1]} : vector<2x128xf32> to vector<2x32xf32>
    %26 = arith.negf %25 : vector<2x32xf32>
    %27 = math.exp %26 : vector<2x32xf32>
    %cst_19 = arith.constant 1.000000e+00 : f32
    %28 = vector.broadcast %cst_19 : f32 to vector<2x32xf32>
    %29 = arith.addf %28, %27 : vector<2x32xf32>
    %30 = arith.divf %28, %29 : vector<2x32xf32>
    %31 = vector.extract_strided_slice %18 {offsets = [0, 64], sizes = [2, 32], strides = [1, 1]} : vector<2x128xf32> to vector<2x32xf32>
    %32 = math.tanh %31 : vector<2x32xf32>
    %33 = vector.extract_strided_slice %18 {offsets = [0, 96], sizes = [2, 32], strides = [1, 1]} : vector<2x128xf32> to vector<2x32xf32>
    %34 = arith.negf %33 : vector<2x32xf32>
    %35 = math.exp %34 : vector<2x32xf32>
    %cst_20 = arith.constant 1.000000e+00 : f32
    %36 = vector.broadcast %cst_20 : f32 to vector<2x32xf32>
    %37 = arith.addf %36, %35 : vector<2x32xf32>
    %38 = arith.divf %36, %37 : vector<2x32xf32>
    %c0_21 = arith.constant 0 : index
    %c0_22 = arith.constant 0 : index
    %39 = vector.load %arg13[%c0_21, %c0_22] : memref<2x32xf32, #tpu.memory_space<vmem>>, vector<2x32xf32>
    %40 = arith.mulf %30, %39 : vector<2x32xf32>
    %41 = arith.mulf %24, %32 : vector<2x32xf32>
    %42 = arith.addf %40, %41 : vector<2x32xf32>
    %43 = math.tanh %42 : vector<2x32xf32>
    %44 = arith.mulf %38, %43 : vector<2x32xf32>
    %c0_23 = arith.constant 0 : index
    %c0_24 = arith.constant 0 : index
    %45 = vector.load %arg13[%c0_23, %c0_24] : memref<2x32xf32, #tpu.memory_space<vmem>>, vector<2x32xf32>
    tpu.vector_store %arg13[%c0_23, %c0_24], %42 {strides = array<i32>} : memref<2x32xf32, #tpu.memory_space<vmem>>, vector<2x32xf32>,
    %c0_25 = arith.constant 0 : index
    %c0_26 = arith.constant 0 : index
    %46 = vector.load %arg12[%c0_25, %c0_26] : memref<2x32xf32, #tpu.memory_space<vmem>>, vector<2x32xf32>
    tpu.vector_store %arg12[%c0_25, %c0_26], %44 {strides = array<i32>} : memref<2x32xf32, #tpu.memory_space<vmem>>, vector<2x32xf32>,
    %c0_27 = arith.constant 0 : index
    %c0_28 = arith.constant 0 : index
    %c0_29 = arith.constant 0 : index
    %47 = vector.load %arg8[%c0_27, %c0_28, %c0_29] : memref<2x8x32xf32, #tpu.memory_space<vmem>>, vector<2x1x32xf32>
    %48 = vector.shape_cast %47 : vector<2x1x32xf32> to vector<2x32xf32>
    %49 = vector.shape_cast %44 : vector<2x32xf32> to vector<2x1x32xf32>
    tpu.vector_store %arg8[%c0_27, %c0_28, %c0_29], %49 {strides = array<i32>} : memref<2x8x32xf32, #tpu.memory_space<vmem>>, vector<2x1x32xf32>,
    %c0_30 = arith.constant 0 : index
    %c1 = arith.constant 1 : index
    %c0_31 = arith.constant 0 : index
    %50 = vector.load %arg11[%c0_30, %c1, %c0_31] : memref<2x8x128xf32, #tpu.memory_space<vmem>>, vector<2x1x128xf32>
    %51 = vector.shape_cast %50 : vector<2x1x128xf32> to vector<2x128xf32>
    %c0_32 = arith.constant 0 : index
    %c0_33 = arith.constant 0 : index
    %52 = vector.load %arg12[%c0_32, %c0_33] : memref<2x32xf32, #tpu.memory_space<vmem>>, vector<2x32xf32>
    %53 = arith.truncf %52 : vector<2x32xf32> to vector<2x32xbf16>
    %cst_34 = arith.constant dense<0.000000e+00> : vector<2x128xf32>
    %54 = tpu.matmul %53, %4, %cst_34 {dimension_numbers = #tpu.dot_dimension_numbers<[1], [0], [0], [1], [0, 0, 1, 1], [], []>} : vector<2x32xbf16>, vector<32x128xbf16>, vector<2x128xf32> -> vector<2x128xf32>
    %55 = arith.addf %51, %54 : vector<2x128xf32>
    %56 = vector.extract_strided_slice %55 {offsets = [0, 0], sizes = [2, 32], strides = [1, 1]} : vector<2x128xf32> to vector<2x32xf32>
    %57 = arith.negf %56 : vector<2x32xf32>
    %58 = math.exp %57 : vector<2x32xf32>
    %cst_35 = arith.constant 1.000000e+00 : f32
    %59 = vector.broadcast %cst_35 : f32 to vector<2x32xf32>
    %60 = arith.addf %59, %58 : vector<2x32xf32>
    %61 = arith.divf %59, %60 : vector<2x32xf32>
    %62 = vector.extract_strided_slice %55 {offsets = [0, 32], sizes = [2, 32], strides = [1, 1]} : vector<2x128xf32> to vector<2x32xf32>
    %63 = arith.negf %62 : vector<2x32xf32>
    %64 = math.exp %63 : vector<2x32xf32>
    %cst_36 = arith.constant 1.000000e+00 : f32
    %65 = vector.broadcast %cst_36 : f32 to vector<2x32xf32>
    %66 = arith.addf %65, %64 : vector<2x32xf32>
    %67 = arith.divf %65, %66 : vector<2x32xf32>
    %68 = vector.extract_strided_slice %55 {offsets = [0, 64], sizes = [2, 32], strides = [1, 1]} : vector<2x128xf32> to vector<2x32xf32>
    %69 = math.tanh %68 : vector<2x32xf32>
    %70 = vector.extract_strided_slice %55 {offsets = [0, 96], sizes = [2, 32], strides = [1, 1]} : vector<2x128xf32> to vector<2x32xf32>
    %71 = arith.negf %70 : vector<2x32xf32>
    %72 = math.exp %71 : vector<2x32xf32>
    %cst_37 = arith.constant 1.000000e+00 : f32
    %73 = vector.broadcast %cst_37 : f32 to vector<2x32xf32>
    %74 = arith.addf %73, %72 : vector<2x32xf32>
    %75 = arith.divf %73, %74 : vector<2x32xf32>
    %c0_38 = arith.constant 0 : index
    %c0_39 = arith.constant 0 : index
    %76 = vector.load %arg13[%c0_38, %c0_39] : memref<2x32xf32, #tpu.memory_space<vmem>>, vector<2x32xf32>
    %77 = arith.mulf %67, %76 : vector<2x32xf32>
    %78 = arith.mulf %61, %69 : vector<2x32xf32>
    %79 = arith.addf %77, %78 : vector<2x32xf32>
    %80 = math.tanh %79 : vector<2x32xf32>
    %81 = arith.mulf %75, %80 : vector<2x32xf32>
    %c0_40 = arith.constant 0 : index
    %c0_41 = arith.constant 0 : index
    %82 = vector.load %arg13[%c0_40, %c0_41] : memref<2x32xf32, #tpu.memory_space<vmem>>, vector<2x32xf32>
    tpu.vector_store %arg13[%c0_40, %c0_41], %79 {strides = array<i32>} : memref<2x32xf32, #tpu.memory_space<vmem>>, vector<2x32xf32>,
    %c0_42 = arith.constant 0 : index
    %c0_43 = arith.constant 0 : index
    %83 = vector.load %arg12[%c0_42, %c0_43] : memref<2x32xf32, #tpu.memory_space<vmem>>, vector<2x32xf32>
    tpu.vector_store %arg12[%c0_42, %c0_43], %81 {strides = array<i32>} : memref<2x32xf32, #tpu.memory_space<vmem>>, vector<2x32xf32>,
    %c0_44 = arith.constant 0 : index
    %c1_45 = arith.constant 1 : index
    %c0_46 = arith.constant 0 : index
    %84 = vector.load %arg8[%c0_44, %c1_45, %c0_46] : memref<2x8x32xf32, #tpu.memory_space<vmem>>, vector<2x1x32xf32>
    %85 = vector.shape_cast %84 : vector<2x1x32xf32> to vector<2x32xf32>
    %86 = vector.shape_cast %81 : vector<2x32xf32> to vector<2x1x32xf32>
    tpu.vector_store %arg8[%c0_44, %c1_45, %c0_46], %86 {strides = array<i32>} : memref<2x8x32xf32, #tpu.memory_space<vmem>>, vector<2x1x32xf32>,
    %c0_47 = arith.constant 0 : index
    %c2 = arith.constant 2 : index
    %c0_48 = arith.constant 0 : index
    %87 = vector.load %arg11[%c0_47, %c2, %c0_48] : memref<2x8x128xf32, #tpu.memory_space<vmem>>, vector<2x1x128xf32>
    %88 = vector.shape_cast %87 : vector<2x1x128xf32> to vector<2x128xf32>
    %c0_49 = arith.constant 0 : index
    %c0_50 = arith.constant 0 : index
    %89 = vector.load %arg12[%c0_49, %c0_50] : memref<2x32xf32, #tpu.memory_space<vmem>>, vector<2x32xf32>
    %90 = arith.truncf %89 : vector<2x32xf32> to vector<2x32xbf16>
    %cst_51 = arith.constant dense<0.000000e+00> : vector<2x128xf32>
    %91 = tpu.matmul %90, %4, %cst_51 {dimension_numbers = #tpu.dot_dimension_numbers<[1], [0], [0], [1], [0, 0, 1, 1], [], []>} : vector<2x32xbf16>, vector<32x128xbf16>, vector<2x128xf32> -> vector<2x128xf32>
    %92 = arith.addf %88, %91 : vector<2x128xf32>
    %93 = vector.extract_strided_slice %92 {offsets = [0, 0], sizes = [2, 32], strides = [1, 1]} : vector<2x128xf32> to vector<2x32xf32>
    %94 = arith.negf %93 : vector<2x32xf32>
    %95 = math.exp %94 : vector<2x32xf32>
    %cst_52 = arith.constant 1.000000e+00 : f32
    %96 = vector.broadcast %cst_52 : f32 to vector<2x32xf32>
    %97 = arith.addf %96, %95 : vector<2x32xf32>
    %98 = arith.divf %96, %97 : vector<2x32xf32>
    %99 = vector.extract_strided_slice %92 {offsets = [0, 32], sizes = [2, 32], strides = [1, 1]} : vector<2x128xf32> to vector<2x32xf32>
    %100 = arith.negf %99 : vector<2x32xf32>
    %101 = math.exp %100 : vector<2x32xf32>
    %cst_53 = arith.constant 1.000000e+00 : f32
    %102 = vector.broadcast %cst_53 : f32 to vector<2x32xf32>
    %103 = arith.addf %102, %101 : vector<2x32xf32>
    %104 = arith.divf %102, %103 : vector<2x32xf32>
    %105 = vector.extract_strided_slice %92 {offsets = [0, 64], sizes = [2, 32], strides = [1, 1]} : vector<2x128xf32> to vector<2x32xf32>
    %106 = math.tanh %105 : vector<2x32xf32>
    %107 = vector.extract_strided_slice %92 {offsets = [0, 96], sizes = [2, 32], strides = [1, 1]} : vector<2x128xf32> to vector<2x32xf32>
    %108 = arith.negf %107 : vector<2x32xf32>
    %109 = math.exp %108 : vector<2x32xf32>
    %cst_54 = arith.constant 1.000000e+00 : f32
    %110 = vector.broadcast %cst_54 : f32 to vector<2x32xf32>
    %111 = arith.addf %110, %109 : vector<2x32xf32>
    %112 = arith.divf %110, %111 : vector<2x32xf32>
    %c0_55 = arith.constant 0 : index
    %c0_56 = arith.constant 0 : index
    %113 = vector.load %arg13[%c0_55, %c0_56] : memref<2x32xf32, #tpu.memory_space<vmem>>, vector<2x32xf32>
    %114 = arith.mulf %104, %113 : vector<2x32xf32>
    %115 = arith.mulf %98, %106 : vector<2x32xf32>
    %116 = arith.addf %114, %115 : vector<2x32xf32>
    %117 = math.tanh %116 : vector<2x32xf32>
    %118 = arith.mulf %112, %117 : vector<2x32xf32>
    %c0_57 = arith.constant 0 : index
    %c0_58 = arith.constant 0 : index
    %119 = vector.load %arg13[%c0_57, %c0_58] : memref<2x32xf32, #tpu.memory_space<vmem>>, vector<2x32xf32>
    tpu.vector_store %arg13[%c0_57, %c0_58], %116 {strides = array<i32>} : memref<2x32xf32, #tpu.memory_space<vmem>>, vector<2x32xf32>,
    %c0_59 = arith.constant 0 : index
    %c0_60 = arith.constant 0 : index
    %120 = vector.load %arg12[%c0_59, %c0_60] : memref<2x32xf32, #tpu.memory_space<vmem>>, vector<2x32xf32>
    tpu.vector_store %arg12[%c0_59, %c0_60], %118 {strides = array<i32>} : memref<2x32xf32, #tpu.memory_space<vmem>>, vector<2x32xf32>,
    %c0_61 = arith.constant 0 : index
    %c2_62 = arith.constant 2 : index
    %c0_63 = arith.constant 0 : index
    %121 = vector.load %arg8[%c0_61, %c2_62, %c0_63] : memref<2x8x32xf32, #tpu.memory_space<vmem>>, vector<2x1x32xf32>
    %122 = vector.shape_cast %121 : vector<2x1x32xf32> to vector<2x32xf32>
    %123 = vector.shape_cast %118 : vector<2x32xf32> to vector<2x1x32xf32>
    tpu.vector_store %arg8[%c0_61, %c2_62, %c0_63], %123 {strides = array<i32>} : memref<2x8x32xf32, #tpu.memory_space<vmem>>, vector<2x1x32xf32>,
    %c0_64 = arith.constant 0 : index
    %c3 = arith.constant 3 : index
    %c0_65 = arith.constant 0 : index
    %124 = vector.load %arg11[%c0_64, %c3, %c0_65] : memref<2x8x128xf32, #tpu.memory_space<vmem>>, vector<2x1x128xf32>
    %125 = vector.shape_cast %124 : vector<2x1x128xf32> to vector<2x128xf32>
    %c0_66 = arith.constant 0 : index
    %c0_67 = arith.constant 0 : index
    %126 = vector.load %arg12[%c0_66, %c0_67] : memref<2x32xf32, #tpu.memory_space<vmem>>, vector<2x32xf32>
    %127 = arith.truncf %126 : vector<2x32xf32> to vector<2x32xbf16>
    %cst_68 = arith.constant dense<0.000000e+00> : vector<2x128xf32>
    %128 = tpu.matmul %127, %4, %cst_68 {dimension_numbers = #tpu.dot_dimension_numbers<[1], [0], [0], [1], [0, 0, 1, 1], [], []>} : vector<2x32xbf16>, vector<32x128xbf16>, vector<2x128xf32> -> vector<2x128xf32>
    %129 = arith.addf %125, %128 : vector<2x128xf32>
    %130 = vector.extract_strided_slice %129 {offsets = [0, 0], sizes = [2, 32], strides = [1, 1]} : vector<2x128xf32> to vector<2x32xf32>
    %131 = arith.negf %130 : vector<2x32xf32>
    %132 = math.exp %131 : vector<2x32xf32>
    %cst_69 = arith.constant 1.000000e+00 : f32
    %133 = vector.broadcast %cst_69 : f32 to vector<2x32xf32>
    %134 = arith.addf %133, %132 : vector<2x32xf32>
    %135 = arith.divf %133, %134 : vector<2x32xf32>
    %136 = vector.extract_strided_slice %129 {offsets = [0, 32], sizes = [2, 32], strides = [1, 1]} : vector<2x128xf32> to vector<2x32xf32>
    %137 = arith.negf %136 : vector<2x32xf32>
    %138 = math.exp %137 : vector<2x32xf32>
    %cst_70 = arith.constant 1.000000e+00 : f32
    %139 = vector.broadcast %cst_70 : f32 to vector<2x32xf32>
    %140 = arith.addf %139, %138 : vector<2x32xf32>
    %141 = arith.divf %139, %140 : vector<2x32xf32>
    %142 = vector.extract_strided_slice %129 {offsets = [0, 64], sizes = [2, 32], strides = [1, 1]} : vector<2x128xf32> to vector<2x32xf32>
    %143 = math.tanh %142 : vector<2x32xf32>
    %144 = vector.extract_strided_slice %129 {offsets = [0, 96], sizes = [2, 32], strides = [1, 1]} : vector<2x128xf32> to vector<2x32xf32>
    %145 = arith.negf %144 : vector<2x32xf32>
    %146 = math.exp %145 : vector<2x32xf32>
    %cst_71 = arith.constant 1.000000e+00 : f32
    %147 = vector.broadcast %cst_71 : f32 to vector<2x32xf32>
    %148 = arith.addf %147, %146 : vector<2x32xf32>
    %149 = arith.divf %147, %148 : vector<2x32xf32>
    %c0_72 = arith.constant 0 : index
    %c0_73 = arith.constant 0 : index
    %150 = vector.load %arg13[%c0_72, %c0_73] : memref<2x32xf32, #tpu.memory_space<vmem>>, vector<2x32xf32>
    %151 = arith.mulf %141, %150 : vector<2x32xf32>
    %152 = arith.mulf %135, %143 : vector<2x32xf32>
    %153 = arith.addf %151, %152 : vector<2x32xf32>
    %154 = math.tanh %153 : vector<2x32xf32>
    %155 = arith.mulf %149, %154 : vector<2x32xf32>
    %c0_74 = arith.constant 0 : index
    %c0_75 = arith.constant 0 : index
    %156 = vector.load %arg13[%c0_74, %c0_75] : memref<2x32xf32, #tpu.memory_space<vmem>>, vector<2x32xf32>
    tpu.vector_store %arg13[%c0_74, %c0_75], %153 {strides = array<i32>} : memref<2x32xf32, #tpu.memory_space<vmem>>, vector<2x32xf32>,
    %c0_76 = arith.constant 0 : index
    %c0_77 = arith.constant 0 : index
    %157 = vector.load %arg12[%c0_76, %c0_77] : memref<2x32xf32, #tpu.memory_space<vmem>>, vector<2x32xf32>
    tpu.vector_store %arg12[%c0_76, %c0_77], %155 {strides = array<i32>} : memref<2x32xf32, #tpu.memory_space<vmem>>, vector<2x32xf32>,
    %c0_78 = arith.constant 0 : index
    %c3_79 = arith.constant 3 : index
    %c0_80 = arith.constant 0 : index
    %158 = vector.load %arg8[%c0_78, %c3_79, %c0_80] : memref<2x8x32xf32, #tpu.memory_space<vmem>>, vector<2x1x32xf32>
    %159 = vector.shape_cast %158 : vector<2x1x32xf32> to vector<2x32xf32>
    %160 = vector.shape_cast %155 : vector<2x32xf32> to vector<2x1x32xf32>
    tpu.vector_store %arg8[%c0_78, %c3_79, %c0_80], %160 {strides = array<i32>} : memref<2x8x32xf32, #tpu.memory_space<vmem>>, vector<2x1x32xf32>,
    %c0_81 = arith.constant 0 : index
    %c4 = arith.constant 4 : index
    %c0_82 = arith.constant 0 : index
    %161 = vector.load %arg11[%c0_81, %c4, %c0_82] : memref<2x8x128xf32, #tpu.memory_space<vmem>>, vector<2x1x128xf32>
    %162 = vector.shape_cast %161 : vector<2x1x128xf32> to vector<2x128xf32>
    %c0_83 = arith.constant 0 : index
    %c0_84 = arith.constant 0 : index
    %163 = vector.load %arg12[%c0_83, %c0_84] : memref<2x32xf32, #tpu.memory_space<vmem>>, vector<2x32xf32>
    %164 = arith.truncf %163 : vector<2x32xf32> to vector<2x32xbf16>
    %cst_85 = arith.constant dense<0.000000e+00> : vector<2x128xf32>
    %165 = tpu.matmul %164, %4, %cst_85 {dimension_numbers = #tpu.dot_dimension_numbers<[1], [0], [0], [1], [0, 0, 1, 1], [], []>} : vector<2x32xbf16>, vector<32x128xbf16>, vector<2x128xf32> -> vector<2x128xf32>
    %166 = arith.addf %162, %165 : vector<2x128xf32>
    %167 = vector.extract_strided_slice %166 {offsets = [0, 0], sizes = [2, 32], strides = [1, 1]} : vector<2x128xf32> to vector<2x32xf32>
    %168 = arith.negf %167 : vector<2x32xf32>
    %169 = math.exp %168 : vector<2x32xf32>
    %cst_86 = arith.constant 1.000000e+00 : f32
    %170 = vector.broadcast %cst_86 : f32 to vector<2x32xf32>
    %171 = arith.addf %170, %169 : vector<2x32xf32>
    %172 = arith.divf %170, %171 : vector<2x32xf32>
    %173 = vector.extract_strided_slice %166 {offsets = [0, 32], sizes = [2, 32], strides = [1, 1]} : vector<2x128xf32> to vector<2x32xf32>
    %174 = arith.negf %173 : vector<2x32xf32>
    %175 = math.exp %174 : vector<2x32xf32>
    %cst_87 = arith.constant 1.000000e+00 : f32
    %176 = vector.broadcast %cst_87 : f32 to vector<2x32xf32>
    %177 = arith.addf %176, %175 : vector<2x32xf32>
    %178 = arith.divf %176, %177 : vector<2x32xf32>
    %179 = vector.extract_strided_slice %166 {offsets = [0, 64], sizes = [2, 32], strides = [1, 1]} : vector<2x128xf32> to vector<2x32xf32>
    %180 = math.tanh %179 : vector<2x32xf32>
    %181 = vector.extract_strided_slice %166 {offsets = [0, 96], sizes = [2, 32], strides = [1, 1]} : vector<2x128xf32> to vector<2x32xf32>
    %182 = arith.negf %181 : vector<2x32xf32>
    %183 = math.exp %182 : vector<2x32xf32>
    %cst_88 = arith.constant 1.000000e+00 : f32
    %184 = vector.broadcast %cst_88 : f32 to vector<2x32xf32>
    %185 = arith.addf %184, %183 : vector<2x32xf32>
    %186 = arith.divf %184, %185 : vector<2x32xf32>
    %c0_89 = arith.constant 0 : index
    %c0_90 = arith.constant 0 : index
    %187 = vector.load %arg13[%c0_89, %c0_90] : memref<2x32xf32, #tpu.memory_space<vmem>>, vector<2x32xf32>
    %188 = arith.mulf %178, %187 : vector<2x32xf32>
    %189 = arith.mulf %172, %180 : vector<2x32xf32>
    %190 = arith.addf %188, %189 : vector<2x32xf32>
    %191 = math.tanh %190 : vector<2x32xf32>
    %192 = arith.mulf %186, %191 : vector<2x32xf32>
    %c0_91 = arith.constant 0 : index
    %c0_92 = arith.constant 0 : index
    %193 = vector.load %arg13[%c0_91, %c0_92] : memref<2x32xf32, #tpu.memory_space<vmem>>, vector<2x32xf32>
    tpu.vector_store %arg13[%c0_91, %c0_92], %190 {strides = array<i32>} : memref<2x32xf32, #tpu.memory_space<vmem>>, vector<2x32xf32>,
    %c0_93 = arith.constant 0 : index
    %c0_94 = arith.constant 0 : index
    %194 = vector.load %arg12[%c0_93, %c0_94] : memref<2x32xf32, #tpu.memory_space<vmem>>, vector<2x32xf32>
    tpu.vector_store %arg12[%c0_93, %c0_94], %192 {strides = array<i32>} : memref<2x32xf32, #tpu.memory_space<vmem>>, vector<2x32xf32>,
    %c0_95 = arith.constant 0 : index
    %c4_96 = arith.constant 4 : index
    %c0_97 = arith.constant 0 : index
    %195 = vector.load %arg8[%c0_95, %c4_96, %c0_97] : memref<2x8x32xf32, #tpu.memory_space<vmem>>, vector<2x1x32xf32>
    %196 = vector.shape_cast %195 : vector<2x1x32xf32> to vector<2x32xf32>
    %197 = vector.shape_cast %192 : vector<2x32xf32> to vector<2x1x32xf32>
    tpu.vector_store %arg8[%c0_95, %c4_96, %c0_97], %197 {strides = array<i32>} : memref<2x8x32xf32, #tpu.memory_space<vmem>>, vector<2x1x32xf32>,
    %c0_98 = arith.constant 0 : index
    %c5 = arith.constant 5 : index
    %c0_99 = arith.constant 0 : index
    %198 = vector.load %arg11[%c0_98, %c5, %c0_99] : memref<2x8x128xf32, #tpu.memory_space<vmem>>, vector<2x1x128xf32>
    %199 = vector.shape_cast %198 : vector<2x1x128xf32> to vector<2x128xf32>
    %c0_100 = arith.constant 0 : index
    %c0_101 = arith.constant 0 : index
    %200 = vector.load %arg12[%c0_100, %c0_101] : memref<2x32xf32, #tpu.memory_space<vmem>>, vector<2x32xf32>
    %201 = arith.truncf %200 : vector<2x32xf32> to vector<2x32xbf16>
    %cst_102 = arith.constant dense<0.000000e+00> : vector<2x128xf32>
    %202 = tpu.matmul %201, %4, %cst_102 {dimension_numbers = #tpu.dot_dimension_numbers<[1], [0], [0], [1], [0, 0, 1, 1], [], []>} : vector<2x32xbf16>, vector<32x128xbf16>, vector<2x128xf32> -> vector<2x128xf32>
    %203 = arith.addf %199, %202 : vector<2x128xf32>
    %204 = vector.extract_strided_slice %203 {offsets = [0, 0], sizes = [2, 32], strides = [1, 1]} : vector<2x128xf32> to vector<2x32xf32>
    %205 = arith.negf %204 : vector<2x32xf32>
    %206 = math.exp %205 : vector<2x32xf32>
    %cst_103 = arith.constant 1.000000e+00 : f32
    %207 = vector.broadcast %cst_103 : f32 to vector<2x32xf32>
    %208 = arith.addf %207, %206 : vector<2x32xf32>
    %209 = arith.divf %207, %208 : vector<2x32xf32>
    %210 = vector.extract_strided_slice %203 {offsets = [0, 32], sizes = [2, 32], strides = [1, 1]} : vector<2x128xf32> to vector<2x32xf32>
    %211 = arith.negf %210 : vector<2x32xf32>
    %212 = math.exp %211 : vector<2x32xf32>
    %cst_104 = arith.constant 1.000000e+00 : f32
    %213 = vector.broadcast %cst_104 : f32 to vector<2x32xf32>
    %214 = arith.addf %213, %212 : vector<2x32xf32>
    %215 = arith.divf %213, %214 : vector<2x32xf32>
    %216 = vector.extract_strided_slice %203 {offsets = [0, 64], sizes = [2, 32], strides = [1, 1]} : vector<2x128xf32> to vector<2x32xf32>
    %217 = math.tanh %216 : vector<2x32xf32>
    %218 = vector.extract_strided_slice %203 {offsets = [0, 96], sizes = [2, 32], strides = [1, 1]} : vector<2x128xf32> to vector<2x32xf32>
    %219 = arith.negf %218 : vector<2x32xf32>
    %220 = math.exp %219 : vector<2x32xf32>
    %cst_105 = arith.constant 1.000000e+00 : f32
    %221 = vector.broadcast %cst_105 : f32 to vector<2x32xf32>
    %222 = arith.addf %221, %220 : vector<2x32xf32>
    %223 = arith.divf %221, %222 : vector<2x32xf32>
    %c0_106 = arith.constant 0 : index
    %c0_107 = arith.constant 0 : index
    %224 = vector.load %arg13[%c0_106, %c0_107] : memref<2x32xf32, #tpu.memory_space<vmem>>, vector<2x32xf32>
    %225 = arith.mulf %215, %224 : vector<2x32xf32>
    %226 = arith.mulf %209, %217 : vector<2x32xf32>
    %227 = arith.addf %225, %226 : vector<2x32xf32>
    %228 = math.tanh %227 : vector<2x32xf32>
    %229 = arith.mulf %223, %228 : vector<2x32xf32>
    %c0_108 = arith.constant 0 : index
    %c0_109 = arith.constant 0 : index
    %230 = vector.load %arg13[%c0_108, %c0_109] : memref<2x32xf32, #tpu.memory_space<vmem>>, vector<2x32xf32>
    tpu.vector_store %arg13[%c0_108, %c0_109], %227 {strides = array<i32>} : memref<2x32xf32, #tpu.memory_space<vmem>>, vector<2x32xf32>,
    %c0_110 = arith.constant 0 : index
    %c0_111 = arith.constant 0 : index
    %231 = vector.load %arg12[%c0_110, %c0_111] : memref<2x32xf32, #tpu.memory_space<vmem>>, vector<2x32xf32>
    tpu.vector_store %arg12[%c0_110, %c0_111], %229 {strides = array<i32>} : memref<2x32xf32, #tpu.memory_space<vmem>>, vector<2x32xf32>,
    %c0_112 = arith.constant 0 : index
    %c5_113 = arith.constant 5 : index
    %c0_114 = arith.constant 0 : index
    %232 = vector.load %arg8[%c0_112, %c5_113, %c0_114] : memref<2x8x32xf32, #tpu.memory_space<vmem>>, vector<2x1x32xf32>
    %233 = vector.shape_cast %232 : vector<2x1x32xf32> to vector<2x32xf32>
    %234 = vector.shape_cast %229 : vector<2x32xf32> to vector<2x1x32xf32>
    tpu.vector_store %arg8[%c0_112, %c5_113, %c0_114], %234 {strides = array<i32>} : memref<2x8x32xf32, #tpu.memory_space<vmem>>, vector<2x1x32xf32>,
    %c0_115 = arith.constant 0 : index
    %c6 = arith.constant 6 : index
    %c0_116 = arith.constant 0 : index
    %235 = vector.load %arg11[%c0_115, %c6, %c0_116] : memref<2x8x128xf32, #tpu.memory_space<vmem>>, vector<2x1x128xf32>
    %236 = vector.shape_cast %235 : vector<2x1x128xf32> to vector<2x128xf32>
    %c0_117 = arith.constant 0 : index
    %c0_118 = arith.constant 0 : index
    %237 = vector.load %arg12[%c0_117, %c0_118] : memref<2x32xf32, #tpu.memory_space<vmem>>, vector<2x32xf32>
    %238 = arith.truncf %237 : vector<2x32xf32> to vector<2x32xbf16>
    %cst_119 = arith.constant dense<0.000000e+00> : vector<2x128xf32>
    %239 = tpu.matmul %238, %4, %cst_119 {dimension_numbers = #tpu.dot_dimension_numbers<[1], [0], [0], [1], [0, 0, 1, 1], [], []>} : vector<2x32xbf16>, vector<32x128xbf16>, vector<2x128xf32> -> vector<2x128xf32>
    %240 = arith.addf %236, %239 : vector<2x128xf32>
    %241 = vector.extract_strided_slice %240 {offsets = [0, 0], sizes = [2, 32], strides = [1, 1]} : vector<2x128xf32> to vector<2x32xf32>
    %242 = arith.negf %241 : vector<2x32xf32>
    %243 = math.exp %242 : vector<2x32xf32>
    %cst_120 = arith.constant 1.000000e+00 : f32
    %244 = vector.broadcast %cst_120 : f32 to vector<2x32xf32>
    %245 = arith.addf %244, %243 : vector<2x32xf32>
    %246 = arith.divf %244, %245 : vector<2x32xf32>
    %247 = vector.extract_strided_slice %240 {offsets = [0, 32], sizes = [2, 32], strides = [1, 1]} : vector<2x128xf32> to vector<2x32xf32>
    %248 = arith.negf %247 : vector<2x32xf32>
    %249 = math.exp %248 : vector<2x32xf32>
    %cst_121 = arith.constant 1.000000e+00 : f32
    %250 = vector.broadcast %cst_121 : f32 to vector<2x32xf32>
    %251 = arith.addf %250, %249 : vector<2x32xf32>
    %252 = arith.divf %250, %251 : vector<2x32xf32>
    %253 = vector.extract_strided_slice %240 {offsets = [0, 64], sizes = [2, 32], strides = [1, 1]} : vector<2x128xf32> to vector<2x32xf32>
    %254 = math.tanh %253 : vector<2x32xf32>
    %255 = vector.extract_strided_slice %240 {offsets = [0, 96], sizes = [2, 32], strides = [1, 1]} : vector<2x128xf32> to vector<2x32xf32>
    %256 = arith.negf %255 : vector<2x32xf32>
    %257 = math.exp %256 : vector<2x32xf32>
    %cst_122 = arith.constant 1.000000e+00 : f32
    %258 = vector.broadcast %cst_122 : f32 to vector<2x32xf32>
    %259 = arith.addf %258, %257 : vector<2x32xf32>
    %260 = arith.divf %258, %259 : vector<2x32xf32>
    %c0_123 = arith.constant 0 : index
    %c0_124 = arith.constant 0 : index
    %261 = vector.load %arg13[%c0_123, %c0_124] : memref<2x32xf32, #tpu.memory_space<vmem>>, vector<2x32xf32>
    %262 = arith.mulf %252, %261 : vector<2x32xf32>
    %263 = arith.mulf %246, %254 : vector<2x32xf32>
    %264 = arith.addf %262, %263 : vector<2x32xf32>
    %265 = math.tanh %264 : vector<2x32xf32>
    %266 = arith.mulf %260, %265 : vector<2x32xf32>
    %c0_125 = arith.constant 0 : index
    %c0_126 = arith.constant 0 : index
    %267 = vector.load %arg13[%c0_125, %c0_126] : memref<2x32xf32, #tpu.memory_space<vmem>>, vector<2x32xf32>
    tpu.vector_store %arg13[%c0_125, %c0_126], %264 {strides = array<i32>} : memref<2x32xf32, #tpu.memory_space<vmem>>, vector<2x32xf32>,
    %c0_127 = arith.constant 0 : index
    %c0_128 = arith.constant 0 : index
    %268 = vector.load %arg12[%c0_127, %c0_128] : memref<2x32xf32, #tpu.memory_space<vmem>>, vector<2x32xf32>
    tpu.vector_store %arg12[%c0_127, %c0_128], %266 {strides = array<i32>} : memref<2x32xf32, #tpu.memory_space<vmem>>, vector<2x32xf32>,
    %c0_129 = arith.constant 0 : index
    %c6_130 = arith.constant 6 : index
    %c0_131 = arith.constant 0 : index
    %269 = vector.load %arg8[%c0_129, %c6_130, %c0_131] : memref<2x8x32xf32, #tpu.memory_space<vmem>>, vector<2x1x32xf32>
    %270 = vector.shape_cast %269 : vector<2x1x32xf32> to vector<2x32xf32>
    %271 = vector.shape_cast %266 : vector<2x32xf32> to vector<2x1x32xf32>
    tpu.vector_store %arg8[%c0_129, %c6_130, %c0_131], %271 {strides = array<i32>} : memref<2x8x32xf32, #tpu.memory_space<vmem>>, vector<2x1x32xf32>,
    %c0_132 = arith.constant 0 : index
    %c7 = arith.constant 7 : index
    %c0_133 = arith.constant 0 : index
    %272 = vector.load %arg11[%c0_132, %c7, %c0_133] : memref<2x8x128xf32, #tpu.memory_space<vmem>>, vector<2x1x128xf32>
    %273 = vector.shape_cast %272 : vector<2x1x128xf32> to vector<2x128xf32>
    %c0_134 = arith.constant 0 : index
    %c0_135 = arith.constant 0 : index
    %274 = vector.load %arg12[%c0_134, %c0_135] : memref<2x32xf32, #tpu.memory_space<vmem>>, vector<2x32xf32>
    %275 = arith.truncf %274 : vector<2x32xf32> to vector<2x32xbf16>
    %cst_136 = arith.constant dense<0.000000e+00> : vector<2x128xf32>
    %276 = tpu.matmul %275, %4, %cst_136 {dimension_numbers = #tpu.dot_dimension_numbers<[1], [0], [0], [1], [0, 0, 1, 1], [], []>} : vector<2x32xbf16>, vector<32x128xbf16>, vector<2x128xf32> -> vector<2x128xf32>
    %277 = arith.addf %273, %276 : vector<2x128xf32>
    %278 = vector.extract_strided_slice %277 {offsets = [0, 0], sizes = [2, 32], strides = [1, 1]} : vector<2x128xf32> to vector<2x32xf32>
    %279 = arith.negf %278 : vector<2x32xf32>
    %280 = math.exp %279 : vector<2x32xf32>
    %cst_137 = arith.constant 1.000000e+00 : f32
    %281 = vector.broadcast %cst_137 : f32 to vector<2x32xf32>
    %282 = arith.addf %281, %280 : vector<2x32xf32>
    %283 = arith.divf %281, %282 : vector<2x32xf32>
    %284 = vector.extract_strided_slice %277 {offsets = [0, 32], sizes = [2, 32], strides = [1, 1]} : vector<2x128xf32> to vector<2x32xf32>
    %285 = arith.negf %284 : vector<2x32xf32>
    %286 = math.exp %285 : vector<2x32xf32>
    %cst_138 = arith.constant 1.000000e+00 : f32
    %287 = vector.broadcast %cst_138 : f32 to vector<2x32xf32>
    %288 = arith.addf %287, %286 : vector<2x32xf32>
    %289 = arith.divf %287, %288 : vector<2x32xf32>
    %290 = vector.extract_strided_slice %277 {offsets = [0, 64], sizes = [2, 32], strides = [1, 1]} : vector<2x128xf32> to vector<2x32xf32>
    %291 = math.tanh %290 : vector<2x32xf32>
    %292 = vector.extract_strided_slice %277 {offsets = [0, 96], sizes = [2, 32], strides = [1, 1]} : vector<2x128xf32> to vector<2x32xf32>
    %293 = arith.negf %292 : vector<2x32xf32>
    %294 = math.exp %293 : vector<2x32xf32>
    %cst_139 = arith.constant 1.000000e+00 : f32
    %295 = vector.broadcast %cst_139 : f32 to vector<2x32xf32>
    %296 = arith.addf %295, %294 : vector<2x32xf32>
    %297 = arith.divf %295, %296 : vector<2x32xf32>
    %c0_140 = arith.constant 0 : index
    %c0_141 = arith.constant 0 : index
    %298 = vector.load %arg13[%c0_140, %c0_141] : memref<2x32xf32, #tpu.memory_space<vmem>>, vector<2x32xf32>
    %299 = arith.mulf %289, %298 : vector<2x32xf32>
    %300 = arith.mulf %283, %291 : vector<2x32xf32>
    %301 = arith.addf %299, %300 : vector<2x32xf32>
    %302 = math.tanh %301 : vector<2x32xf32>
    %303 = arith.mulf %297, %302 : vector<2x32xf32>
    %c0_142 = arith.constant 0 : index
    %c0_143 = arith.constant 0 : index
    %304 = vector.load %arg13[%c0_142, %c0_143] : memref<2x32xf32, #tpu.memory_space<vmem>>, vector<2x32xf32>
    tpu.vector_store %arg13[%c0_142, %c0_143], %301 {strides = array<i32>} : memref<2x32xf32, #tpu.memory_space<vmem>>, vector<2x32xf32>,
    %c0_144 = arith.constant 0 : index
    %c0_145 = arith.constant 0 : index
    %305 = vector.load %arg12[%c0_144, %c0_145] : memref<2x32xf32, #tpu.memory_space<vmem>>, vector<2x32xf32>
    tpu.vector_store %arg12[%c0_144, %c0_145], %303 {strides = array<i32>} : memref<2x32xf32, #tpu.memory_space<vmem>>, vector<2x32xf32>,
    %c0_146 = arith.constant 0 : index
    %c7_147 = arith.constant 7 : index
    %c0_148 = arith.constant 0 : index
    %306 = vector.load %arg8[%c0_146, %c7_147, %c0_148] : memref<2x8x32xf32, #tpu.memory_space<vmem>>, vector<2x1x32xf32>
    %307 = vector.shape_cast %306 : vector<2x1x32xf32> to vector<2x32xf32>
    %308 = vector.shape_cast %303 : vector<2x32xf32> to vector<2x1x32xf32>
    tpu.vector_store %arg8[%c0_146, %c7_147, %c0_148], %308 {strides = array<i32>} : memref<2x8x32xf32, #tpu.memory_space<vmem>>, vector<2x1x32xf32>,
    %c0_i32_149 = arith.constant 0 : i32
    %309 = arith.cmpi eq, %arg1, %c0_i32_149 : i32
    %310 = arith.extui %309 : i1 to i32
    %c0_i32_150 = arith.constant 0 : i32
    %311 = arith.cmpi ne, %310, %c0_i32_150 : i32
    scf.if %311 {
      %c0_151 = arith.constant 0 : index
      %c0_152 = arith.constant 0 : index
      %312 = vector.load %arg12[%c0_151, %c0_152] : memref<2x32xf32, #tpu.memory_space<vmem>>, vector<2x32xf32>
      %c0_153 = arith.constant 0 : index
      %c0_154 = arith.constant 0 : index
      %c0_155 = arith.constant 0 : index
      %313 = vector.load %arg9[%c0_153, %c0_154, %c0_155] : memref<1x2x32xf32, #tpu.memory_space<vmem>>, vector<1x2x32xf32>
      %314 = vector.shape_cast %313 : vector<1x2x32xf32> to vector<2x32xf32>
      %315 = vector.shape_cast %312 : vector<2x32xf32> to vector<1x2x32xf32>
      tpu.vector_store %arg9[%c0_153, %c0_154, %c0_155], %315 {strides = array<i32>} : memref<1x2x32xf32, #tpu.memory_space<vmem>>, vector<1x2x32xf32>,
      %c0_156 = arith.constant 0 : index
      %c0_157 = arith.constant 0 : index
      %316 = vector.load %arg13[%c0_156, %c0_157] : memref<2x32xf32, #tpu.memory_space<vmem>>, vector<2x32xf32>
      %c0_158 = arith.constant 0 : index
      %c0_159 = arith.constant 0 : index
      %c0_160 = arith.constant 0 : index
      %317 = vector.load %arg10[%c0_158, %c0_159, %c0_160] : memref<1x2x32xf32, #tpu.memory_space<vmem>>, vector<1x2x32xf32>
      %318 = vector.shape_cast %317 : vector<1x2x32xf32> to vector<2x32xf32>
      %319 = vector.shape_cast %316 : vector<2x32xf32> to vector<1x2x32xf32>
      tpu.vector_store %arg10[%c0_158, %c0_159, %c0_160], %319 {strides = array<i32>} : memref<1x2x32xf32, #tpu.memory_space<vmem>>, vector<1x2x32xf32>,
    } else {
    }
    return
  }
  func.func @transform_0(%arg0: i32, %arg1: i32) -> (i32, i32, i32) {
    %c0_i32 = arith.constant 0 : i32
    %c0_i32_0 = arith.constant 0 : i32
    return %arg0, %arg1, %c0_i32 : i32, i32, i32
  }
  func.func @transform_1(%arg0: i32, %arg1: i32) -> (i32, i32) {
    %c0_i32 = arith.constant 0 : i32
    %c0_i32_0 = arith.constant 0 : i32
    %c0_i32_1 = arith.constant 0 : i32
    return %c0_i32, %c0_i32_0 : i32, i32
  }
  func.func @transform_2(%arg0: i32, %arg1: i32) -> (i32, i32) {
    %c0_i32 = arith.constant 0 : i32
    %c0_i32_0 = arith.constant 0 : i32
    %c0_i32_1 = arith.constant 0 : i32
    return %c0_i32, %c0_i32_0 : i32, i32
  }
  func.func @transform_3(%arg0: i32, %arg1: i32) -> (i32, i32) {
    %c0_i32 = arith.constant 0 : i32
    %c0_i32_0 = arith.constant 0 : i32
    %c0_i32_1 = arith.constant 0 : i32
    return %c0_i32, %c0_i32_0 : i32, i32
  }
  func.func @transform_4(%arg0: i32, %arg1: i32) -> (i32, i32, i32) {
    %c0_i32 = arith.constant 0 : i32
    %c0_i32_0 = arith.constant 0 : i32
    %c0_i32_1 = arith.constant 0 : i32
    return %arg0, %c0_i32, %c0_i32_0 : i32, i32, i32
  }
  func.func @transform_5(%arg0: i32, %arg1: i32) -> (i32, i32, i32) {
    %c0_i32 = arith.constant 0 : i32
    %c0_i32_0 = arith.constant 0 : i32
    %c0_i32_1 = arith.constant 0 : i32
    return %arg0, %c0_i32, %c0_i32_0 : i32, i32, i32
  }
  func.func @transform_6(%arg0: i32, %arg1: i32) -> (i32, i32, i32) {
    %c0_i32 = arith.constant 0 : i32
    %c0_i32_0 = arith.constant 0 : i32
    return %arg0, %arg1, %c0_i32 : i32, i32, i32
  }
  func.func @transform_7(%arg0: i32, %arg1: i32) -> (i32, i32, i32) {
    %c0_i32 = arith.constant 0 : i32
    %c0_i32_0 = arith.constant 0 : i32
    %c0_i32_1 = arith.constant 0 : i32
    return %arg0, %c0_i32, %c0_i32_0 : i32, i32, i32
  }
  func.func @transform_8(%arg0: i32, %arg1: i32) -> (i32, i32, i32) {
    %c0_i32 = arith.constant 0 : i32
    %c0_i32_0 = arith.constant 0 : i32
    %c0_i32_1 = arith.constant 0 : i32
    return %arg0, %c0_i32, %c0_i32_0 : i32, i32, i32
  }
}

</mosaic_0001>

<bundles_post_ra>
// kernel: rnn_forward.1
= control target key start
LH: loop header
LB: loop body
LE: loop exit
PB: predicated region body
PF: predicated region fallthrough
CT: control target
= control target key end

     0   :  { %14 = vsyncpa [#allocation6], 0  ;;  %v1587_v1 = vmov 0.0   ;;  %vm1588_vm0 = vmmov 0   ;;  %vm64_vm1 = vcmask 130048   ;;  %vm34_vm2 = vcmask 254976   ;;  %s1973_s0 = inlined_call_operand.vmem [shape: bf16[2,8,16], index: 0, kind: input, shape index: {}]   ;;  %s1974_s1 = inlined_call_operand.vmem [shape: bf16[16,128], index: 1, kind: input, shape index: {}]   ;;  %s1975_s2 = inlined_call_operand.vmem [shape: bf16[32,128], index: 2, kind: input, shape index: {}]   ;;  %s1976_s3 = inlined_call_operand.vmem [shape: f32[1,128], index: 3, kind: input, shape index: {}]   ;;  %s1977_s4 = inlined_call_operand.vmem [shape: f32[1,2,32], index: 4, kind: input, shape index: {}, may-alias: {4,5}]   ;;  %s1978_s5 = inlined_call_operand.vmem [shape: f32[1,2,32], index: 5, kind: input, shape index: {}, may-alias: {4,5}]   ;;  %s1979_s6 = inlined_call_operand.hbm [shape: f32[2,8,32], index: 6, kind: output, shape index: {0}]   ;;  %s1980_s7 = inlined_call_operand.hbm [shape: f32[1,2,32], index: 7, kind: output, shape index: {1}]   ;;  %s1981_s8 = inlined_call_operand.hbm [shape: f32[1,2,32], index: 8, kind: output, shape index: {2}]  }
   0x1   :  { %v1385_v0 = vld [vmem:[%s1974_s1] sm:$0xff]   ;;  %1305 = vmatprep.subr.bf16.mxu0 %v1587_v1  ;;  %1311 = vmatprep.subr.bf16.mxu1 %v1587_v1  ;;  %v1664_v4 = vld [vmem:[%s1975_s2 + $0x8] sm:$0xff]  }
   0x2   :  { %v1386_v2 = vld [vmem:[%s1973_s0] sm:$0xff]   ;;  %1306 = vmatpush3.bf16.msra.mxu0 %v1385_v0  ;;  %1307 = vmatprep.mubr.msk.bf16.mxu0 %vm1588_vm0, %v1587_v1 }
   0x3   :  { %v1655_v3 = vld [vmem:[%s1975_s2] sm:$0xff]   ;;  %1315 = vmatprep.mubr.msk.bf16.mxu1 %vm1588_vm0, %v1587_v1  ;;  %1319 = vmatprep.subr.bf16.mxu0 %v1587_v1 }
   0x4   :  { %1312 = vmatpush3.bf16.msra.mxu1 %v1655_v3  ;;  %v33_v5 = vld [vmem:[%s1977_s4] sm:$0x3] }
   0x5   :  { %v36_v6 = vld [vmem:[%s1978_s5] sm:$0x3]  ;;  %1308 = vmatmul.mubr.msk.bf16.vlgmr.msra.gmra.mrb[0].mxu0 %vm64_vm1, %v1386_v2  ;;  %1313 = vmatprep.subr.bf16.mxu1 %v1587_v1  ;;  %35 = vst.msk [vmem:[#allocation3] sm:$0x3] %vm34_vm2, %v33_v5 }
   0x6   :  { %37 = vst.msk [vmem:[#allocation4] sm:$0x3] %vm34_vm2, %v36_v6 }
   0x7   :  { %15 = vsyncpa [#allocation8], 0  ;;  %1320 = vmatpush3.bf16.msra.mxu0 %v1655_v3  ;;  %1323 = vmatprep.mubr.msk.bf16.mxu0 %vm1588_vm0, %v1587_v1  ;;  %vm127_vm3 = vcmask 261120   ;;  %s1589_s2 = smov 32   ;;  %v1249_v11 = vld [vmem:[%s1976_s3] ss:$0 sm:$0xff] }
   0x8   :  { %1321 = vmatprep.subr.bf16.mxu0 %v1587_v1  ;;  %1314 = vmatpush3.bf16.msra.mxu1 %v1664_v4  ;;  %s1590_s3 = smov 64   ;;  %vm237_vm4 = vcmask 1041409   ;;  %s1591_s15 = smov 96   ;;  %vm258_vm5 = vcmask 253952  }
   0x9   :  { %1327 = vmatprep.subr.bf16.mxu1 %v1587_v1  ;;  %s1592_s16 = smov [#allocation7]   ;;  %s1593_s18 = smov [#allocation5]  }
   0xa   :  { %s1224_s17 = sshll.u32 %s1592_s16, 4  ;;  %s1211_s19 = sshll.u32 %s1593_s18, 4  ;;  %s1225_s17 = int_to_ptr.vmem [resolvable:$true] %s1224_s17  ;;  %s1927_s19 = int_to_ptr.vmem [resolvable:$true] %s1211_s19 }
   0xb   :  { %1322 = vmatpush3.bf16.msra.mxu0 %v1664_v4  ;;  %s1594_s20 = smov [#allocation9]   ;;  %s1517_s22 = scalar_lea.vmem %s1225_s17, 32 }
   0xc   :  { %1335 = vmatprep.subr.bf16.mxu0 %v1587_v1  ;;  %v113_v7 = vld [vmem:[#allocation3] sm:$0x3]  ;;  %s1234_s21 = sshll.u32 %s1594_s20, 4  ;;  %p1518_p0 = scmp.ne.s32.totalorder %s1225_s17, %s1517_s22  ;;  %s1235_s21 = int_to_ptr.vmem [resolvable:$true] %s1234_s21 }
   0xd   :  { %v191_v8 = vld [vmem:[#allocation4] sm:$0x3]  ;;  %v114_v9 = vpack.c.bf16 %v113_v7, %v113_v7  ;;  %p1522_p1 = scmp.lt.s32.totalorder %s1225_s17, %s1225_s17  ;;  %p1523_p2 = scmp.lt.s32.totalorder %s1517_s22, %s1517_s22 }
   0xe   :  { %v193_v10 = vrot.slane %v191_v8, 1 }
   0xf   :  { %1316 = vmatmul.mubr.msk.bf16.vlgmr.msra.gmra.mrb[0].mxu1 %vm127_vm3, %v114_v9  ;;  %p1524_p3 = por %p1523_p2, %p1522_p1 }
  0x10   :  { %196 = vrot.lane.b32.xlu1 %v193_v10, %s1589_s2  ;;  %1328 = vmatpush3.bf16.msra.mxu1 %v1655_v3 }
  0x11   :  { %1331 = vmatprep.mubr.msk.bf16.mxu1 %vm1588_vm0, %v1587_v1  ;;  %1329 = vmatprep.subr.bf16.mxu1 %v1587_v1  ;;  %p1525_p4 = pnand %p1524_p3, %p1518_p0 }
  0x14   :  { %194 = vrot.lane.b32.xlu1 %v191_v8, %s1589_s2  ;;  %1330 = vmatpush3.bf16.msra.mxu1 %v1664_v4 }
  0x15   :  { %1343 = vmatprep.subr.bf16.mxu1 %v1587_v1 }
  0x82   :  { %v197_v41 = vpop.permute.xlu1 %196 }
  0x86   :  { %v195_v43 = vpop.permute.xlu1 %194 }
  0xd8   :  { %v102_v12 = vpop.f32.mrb[0].mxu0 }
  0xd9   :  { %v103_v13 = vadd.f32 %v1249_v11, %v102_v12  ;;  %v1309_v14 = vpop.f32.mrb[1].mxu0 }
  0xda   :  { %v105_v15 = vpop.f32.mrb[2].mxu0 }
  0xdb   :  { %109 = vst [vmem:[#allocation2] sm:$0xff] %v103_v13  ;;  %v106_v16 = vadd.f32 %v1249_v11, %v105_v15  ;;  %v1310_v17 = vpop.f32.mrb[3].mxu0 }
  0xdd   :  { %110 = vst [vmem:[#allocation2 + $0x8] sm:$0xff] %v106_v16 }
  0xe2   :  { %v165_v18 = vpop.f32.mrb[0].mxu1  ;;  %v111_v23 = vld [vmem:[#allocation2] sm:$0x1]  ;;  %v261_v63 = vld [vmem:[#allocation2 + $0x1] sm:$0x1] }
  0xe3   :  { %v172_v19 = vrot.slane %v165_v18, 1  ;;  %v1317_v20 = vpop.f32.mrb[1].mxu1  ;;  %v175_v26 = vadd.f32 %v165_v18, %v111_v23 }
  0xe4   :  { %v112_v21 = vld [vmem:[#allocation2 + $0x8] sm:$0x1]  ;;  %v168_v22 = vpop.f32.mrb[2].mxu1  ;;  %v262_v7 = vld [vmem:[#allocation2 + $0x9] sm:$0x1] }
  0xe5   :  { %v176_v24 = vadd.f32 %v172_v19, %v112_v21  ;;  %v1318_v25 = vpop.f32.mrb[3].mxu1  ;;  %v1256_v30 = vmul.f32 -1.442695, %v175_v26 }
  0xe7   :  { %1389 = vtanh.f32 %v176_v24  ;;  %v1257_v29 = vmul.f32 -1.442695, %v176_v24 }
  0xe8   :  { %1391 = vtanh.f32 %v175_v26 }
  0xe9   :  { %1393 = vpow2.f32 %v1257_v29 }
  0xea   :  { %1395 = vpow2.f32 %v1256_v30 }
  0xf1   :  { %v1390_v27 = vpop.eup %1389 }
  0xf2   :  { %206 = vrot.lane.b32.xlu0 %v1390_v27, %s1590_s3  ;;  %v1392_v28 = vpop.eup %1391 }
  0xf3   :  { %v1394_v31 = vpop.eup %1393 }
  0xf4   :  { %v184_v32 = vadd.f32 1.0, %v1394_v31  ;;  %v1396_v33 = vpop.eup %1395 }
  0xf5   :  { %v183_v34 = vadd.f32 1.0, %v1396_v33 }
  0xf6   :  { %204 = vrot.lane.b32.xlu0 %v1392_v28, %s1590_s3  ;;  %1397 = vrcp.f32 %v184_v32 }
  0xf7   :  { %1399 = vrcp.f32 %v183_v34 }
 0x100   :  { %v1398_v35 = vpop.eup %1397 }
 0x101   :  { %v1400_v38 = vpop.eup %1399  ;;  %v201_v42 = vmul.f32 %v1398_v35, %v197_v41 }
 0x102   :  { %v200_v46 = vmul.f32 %v1400_v38, %v195_v43 }
 0x164   :  { %v207_v36 = vpop.permute.xlu0 %206 }
 0x165   :  { %v211_v37 = vmul.f32 %v1398_v35, %v207_v36 }
 0x167   :  { %216 = vrot.lane.b32.xlu0 %v211_v37, %s1589_s2 }
 0x168   :  { %v205_v39 = vpop.permute.xlu0 %204 }
 0x169   :  { %v210_v40 = vmul.f32 %v1400_v38, %v205_v39 }
 0x16b   :  { %214 = vrot.lane.b32.xlu1 %v210_v40, %s1589_s2 }
 0x1d9   :  { %v217_v44 = vpop.permute.xlu0 %216 }
 0x1da   :  { %v221_v45 = vadd.f32 %v217_v44, %v201_v42 }
 0x1dc   :  { %1401 = vtanh.f32 %v221_v45  ;;  %v236_v51 = vrot.slane %v221_v45, 7 }
 0x1dd   :  { %v215_v47 = vpop.permute.xlu1 %214 }
 0x1de   :  { %v220_v48 = vadd.f32 %v215_v47, %v200_v46 }
 0x1e0   :  { %1403 = vtanh.f32 %v220_v48  ;;  %v238_v52 = vsel %vm237_vm4, %v236_v51, %v220_v48 }
 0x1e6   :  { %v1402_v49 = vpop.eup %1401 }
 0x1e7   :  { %228 = vrot.lane.b32.xlu0 %v1402_v49, %s1590_s3  ;;  %v395_v49 = vld [vmem:[#allocation2 + $0x2] sm:$0x1] }
 0x1ea   :  { %v1404_v50 = vpop.eup %1403 }
 0x1eb   :  { %226 = vrot.lane.b32.xlu1 %v1404_v50, %s1590_s3 }
 0x1ef   :  { %239 = vrot.lane.b32.xlu1 %v238_v52, %s1591_s15 }
 0x259   :  { %v229_v53 = vpop.permute.xlu0 %228 }
 0x25a   :  { %v1703_v54 = vmul.f32 %v1398_v35, %v229_v53 }
 0x25c   :  { %v246_v56 = vrot.slane %v1703_v54, 7 }
 0x25d   :  { %v227_v55 = vpop.permute.xlu1 %226 }
 0x25e   :  { %v1706_v57 = vmul.f32 %v1400_v38, %v227_v55  ;;  %v396_v55 = vld [vmem:[#allocation2 + $0xa] sm:$0x1] }
 0x260   :  { %v247_v58 = vsel %vm237_vm4, %v246_v56, %v1706_v57 }
 0x261   :  { %v240_v59 = vpop.permute.xlu1 %239  ;;  %248 = vrot.lane.b32.xlu0 %v247_v58, %s1589_s2 }
 0x262   :  { %243 = vst.msk [vmem:[#allocation4] sm:$0x3] %vm34_vm2, %v240_v59 }
 0x269   :  { %v328_v13 = vld [vmem:[#allocation4] sm:$0x3] }
 0x26a   :  { %v330_v14 = vrot.slane %v328_v13, 1 }
 0x2d3   :  { %v249_v60 = vpop.permute.xlu0 %248 }
 0x2d4   :  { %251 = vst.msk [vmem:[#allocation3] sm:$0x3] %vm34_vm2, %v249_v60 }
 0x2db   :  { %v263_v61 = vld [vmem:[#allocation3] sm:$0x3] }
 0x2dc   :  { %v264_v62 = vpack.c.bf16 %v263_v61, %v263_v61 }
 0x2de   :  { %1324 = vmatmul.mubr.msk.bf16.vlgmr.msra.gmra.mrb[4].mxu0 %vm127_vm3, %v264_v62 }
 0x2df   :  { %1336 = vmatpush3.bf16.msra.mxu0 %v1655_v3  ;;  %1339 = vmatprep.mubr.msk.bf16.mxu0 %vm1588_vm0, %v1587_v1 }
 0x2e0   :  { %1337 = vmatprep.subr.bf16.mxu0 %v1587_v1 }
 0x2e3   :  { %1338 = vmatpush3.bf16.msra.mxu0 %v1664_v4 }
 0x2e4   :  { %1351 = vmatprep.subr.bf16.mxu0 %v1587_v1 }
 0x3b1   :  { %v302_v0 = vpop.f32.mrb[4].mxu0 }
 0x3b2   :  { %v309_v2 = vrot.slane %v302_v0, 1  ;;  %v312_v5 = vadd.f32 %v302_v0, %v261_v63  ;;  %v1325_v6 = vpop.f32.mrb[5].mxu0 }
 0x3b3   :  { %v305_v8 = vpop.f32.mrb[6].mxu0 }
 0x3b4   :  { %v313_v9 = vadd.f32 %v309_v2, %v262_v7  ;;  %1405 = vtanh.f32 %v312_v5  ;;  %v1326_v10 = vpop.f32.mrb[7].mxu0  ;;  %v1259_v15 = vmul.f32 -1.442695, %v312_v5 }
 0x3b6   :  { %1407 = vtanh.f32 %v313_v9  ;;  %v1260_v16 = vmul.f32 -1.442695, %v313_v9 }
 0x3b7   :  { %1409 = vpow2.f32 %v1259_v15 }
 0x3b8   :  { %1411 = vpow2.f32 %v1260_v16 }
 0x3be   :  { %v1406_v11 = vpop.eup %1405 }
 0x3bf   :  { %341 = vrot.lane.b32.xlu1 %v1406_v11, %s1590_s3 }
 0x3c0   :  { %v1408_v12 = vpop.eup %1407 }
 0x3c1   :  { %343 = vrot.lane.b32.xlu0 %v1408_v12, %s1590_s3  ;;  %v1410_v17 = vpop.eup %1409 }
 0x3c2   :  { %v1412_v18 = vpop.eup %1411  ;;  %v320_v19 = vadd.f32 1.0, %v1410_v17 }
 0x3c3   :  { %331 = vrot.lane.b32.xlu1 %v328_v13, %s1589_s2  ;;  %v321_v20 = vadd.f32 1.0, %v1412_v18 }
 0x3c4   :  { %1413 = vrcp.f32 %v320_v19 }
 0x3c5   :  { %333 = vrot.lane.b32.xlu0 %v330_v14, %s1589_s2  ;;  %1415 = vrcp.f32 %v321_v20 }
 0x3ce   :  { %v1414_v21 = vpop.eup %1413 }
 0x3cf   :  { %v1416_v24 = vpop.eup %1415 }
 0x431   :  { %v342_v22 = vpop.permute.xlu1 %341 }
 0x432   :  { %v347_v23 = vmul.f32 %v1414_v21, %v342_v22 }
 0x433   :  { %v344_v25 = vpop.permute.xlu0 %343 }
 0x434   :  { %351 = vrot.lane.b32.xlu1 %v347_v23, %s1589_s2  ;;  %v348_v26 = vmul.f32 %v1416_v24, %v344_v25 }
 0x435   :  { %v332_v27 = vpop.permute.xlu1 %331 }
 0x436   :  { %353 = vrot.lane.b32.xlu0 %v348_v26, %s1589_s2  ;;  %v337_v28 = vmul.f32 %v1414_v21, %v332_v27 }
 0x437   :  { %v334_v29 = vpop.permute.xlu0 %333 }
 0x438   :  { %v338_v32 = vmul.f32 %v1416_v24, %v334_v29 }
 0x4a6   :  { %v352_v30 = vpop.permute.xlu1 %351 }
 0x4a7   :  { %v357_v31 = vadd.f32 %v352_v30, %v337_v28 }
 0x4a8   :  { %v354_v33 = vpop.permute.xlu0 %353 }
 0x4a9   :  { %1417 = vtanh.f32 %v357_v31  ;;  %v358_v34 = vadd.f32 %v354_v33, %v338_v32 }
 0x4ab   :  { %1419 = vtanh.f32 %v358_v34  ;;  %v373_v36 = vrot.slane %v358_v34, 7 }
 0x4ad   :  { %v374_v38 = vsel %vm237_vm4, %v373_v36, %v357_v31 }
 0x4b3   :  { %v1418_v35 = vpop.eup %1417 }
 0x4b4   :  { %363 = vrot.lane.b32.xlu1 %v1418_v35, %s1590_s3 }
 0x4b5   :  { %v1420_v37 = vpop.eup %1419 }
 0x4b6   :  { %365 = vrot.lane.b32.xlu0 %v1420_v37, %s1590_s3  ;;  %v529_v37 = vld [vmem:[#allocation2 + $0x3] sm:$0x1] }
 0x4b8   :  { %375 = vrot.lane.b32.xlu1 %v374_v38, %s1591_s15 }
 0x526   :  { %v364_v39 = vpop.permute.xlu1 %363 }
 0x527   :  { %v1733_v43 = vmul.f32 %v1414_v21, %v364_v39 }
 0x528   :  { %v366_v40 = vpop.permute.xlu0 %365 }
 0x529   :  { %v1730_v41 = vmul.f32 %v1416_v24, %v366_v40 }
 0x52a   :  { %v376_v42 = vpop.permute.xlu1 %375 }
 0x52b   :  { %378 = vst.msk [vmem:[#allocation4] sm:$0x3] %vm34_vm2, %v376_v42  ;;  %v381_v44 = vrot.slane %v1730_v41, 7 }
 0x52d   :  { %v382_v45 = vsel %vm237_vm4, %v381_v44, %v1733_v43  ;;  %v530_v44 = vld [vmem:[#allocation2 + $0xb] sm:$0x1] }
 0x52e   :  { %383 = vrot.lane.b32.xlu0 %v382_v45, %s1589_s2 }
 0x532   :  { %v462_v62 = vld [vmem:[#allocation4] sm:$0x3] }
 0x533   :  { %v464_v63 = vrot.slane %v462_v62, 1 }
 0x5a0   :  { %v384_v46 = vpop.permute.xlu0 %383 }
 0x5a1   :  { %386 = vst.msk [vmem:[#allocation3] sm:$0x3] %vm34_vm2, %v384_v46 }
 0x5a8   :  { %v397_v47 = vld [vmem:[#allocation3] sm:$0x3] }
 0x5a9   :  { %v398_v48 = vpack.c.bf16 %v397_v47, %v397_v47 }
 0x5ab   :  { %1332 = vmatmul.mubr.msk.bf16.vlgmr.msra.gmra.mrb[4].mxu1 %vm127_vm3, %v398_v48 }
 0x5ac   :  { %1344 = vmatpush3.bf16.msra.mxu1 %v1655_v3  ;;  %1347 = vmatprep.mubr.msk.bf16.mxu1 %vm1588_vm0, %v1587_v1 }
 0x5ad   :  { %1345 = vmatprep.subr.bf16.mxu1 %v1587_v1 }
 0x5b0   :  { %1346 = vmatpush3.bf16.msra.mxu1 %v1664_v4 }
 0x5b1   :  { %1359 = vmatprep.subr.bf16.mxu1 %v1587_v1 }
 0x67e   :  { %v436_v50 = vpop.f32.mrb[4].mxu1 }
 0x67f   :  { %v443_v51 = vrot.slane %v436_v50, 1  ;;  %v446_v52 = vadd.f32 %v436_v50, %v395_v49  ;;  %v1333_v53 = vpop.f32.mrb[5].mxu1 }
 0x680   :  { %v439_v56 = vpop.f32.mrb[6].mxu1 }
 0x681   :  { %v447_v58 = vadd.f32 %v443_v51, %v396_v55  ;;  %1421 = vtanh.f32 %v446_v52  ;;  %v1334_v59 = vpop.f32.mrb[7].mxu1  ;;  %v1262_v0 = vmul.f32 -1.442695, %v446_v52 }
 0x683   :  { %1423 = vtanh.f32 %v447_v58  ;;  %v1263_v2 = vmul.f32 -1.442695, %v447_v58 }
 0x684   :  { %1425 = vpow2.f32 %v1262_v0 }
 0x685   :  { %1427 = vpow2.f32 %v1263_v2 }
 0x68b   :  { %v1422_v60 = vpop.eup %1421 }
 0x68c   :  { %475 = vrot.lane.b32.xlu1 %v1422_v60, %s1590_s3 }
 0x68d   :  { %v1424_v61 = vpop.eup %1423 }
 0x68e   :  { %477 = vrot.lane.b32.xlu0 %v1424_v61, %s1590_s3  ;;  %v1426_v5 = vpop.eup %1425 }
 0x68f   :  { %v1428_v6 = vpop.eup %1427  ;;  %v454_v7 = vadd.f32 1.0, %v1426_v5 }
 0x690   :  { %465 = vrot.lane.b32.xlu1 %v462_v62, %s1589_s2  ;;  %v455_v8 = vadd.f32 1.0, %v1428_v6 }
 0x691   :  { %1429 = vrcp.f32 %v454_v7 }
 0x692   :  { %467 = vrot.lane.b32.xlu0 %v464_v63, %s1589_s2  ;;  %1431 = vrcp.f32 %v455_v8 }
 0x69b   :  { %v1430_v9 = vpop.eup %1429 }
 0x69c   :  { %v1432_v12 = vpop.eup %1431 }
 0x6fe   :  { %v476_v10 = vpop.permute.xlu1 %475 }
 0x6ff   :  { %v481_v11 = vmul.f32 %v1430_v9, %v476_v10 }
 0x700   :  { %v478_v13 = vpop.permute.xlu0 %477 }
 0x701   :  { %485 = vrot.lane.b32.xlu1 %v481_v11, %s1589_s2  ;;  %v482_v14 = vmul.f32 %v1432_v12, %v478_v13 }
 0x702   :  { %v466_v15 = vpop.permute.xlu1 %465 }
 0x703   :  { %487 = vrot.lane.b32.xlu0 %v482_v14, %s1589_s2  ;;  %v471_v16 = vmul.f32 %v1430_v9, %v466_v15 }
 0x704   :  { %v468_v17 = vpop.permute.xlu0 %467 }
 0x705   :  { %v472_v20 = vmul.f32 %v1432_v12, %v468_v17 }
 0x773   :  { %v486_v18 = vpop.permute.xlu1 %485 }
 0x774   :  { %v491_v19 = vadd.f32 %v486_v18, %v471_v16 }
 0x775   :  { %v488_v21 = vpop.permute.xlu0 %487 }
 0x776   :  { %1433 = vtanh.f32 %v491_v19  ;;  %v492_v22 = vadd.f32 %v488_v21, %v472_v20 }
 0x778   :  { %1435 = vtanh.f32 %v492_v22  ;;  %v507_v24 = vrot.slane %v492_v22, 7 }
 0x77a   :  { %v508_v26 = vsel %vm237_vm4, %v507_v24, %v491_v19 }
 0x780   :  { %v1434_v23 = vpop.eup %1433 }
 0x781   :  { %497 = vrot.lane.b32.xlu1 %v1434_v23, %s1590_s3 }
 0x782   :  { %v1436_v25 = vpop.eup %1435 }
 0x783   :  { %499 = vrot.lane.b32.xlu0 %v1436_v25, %s1590_s3 }
 0x785   :  { %509 = vrot.lane.b32.xlu1 %v508_v26, %s1591_s15 }
 0x7f3   :  { %v498_v27 = vpop.permute.xlu1 %497 }
 0x7f4   :  { %v1760_v31 = vmul.f32 %v1430_v9, %v498_v27  ;;  %v663_v27 = vld [vmem:[#allocation2 + $0x4] sm:$0x1] }
 0x7f5   :  { %v500_v28 = vpop.permute.xlu0 %499 }
 0x7f6   :  { %v1757_v29 = vmul.f32 %v1432_v12, %v500_v28 }
 0x7f7   :  { %v510_v30 = vpop.permute.xlu1 %509 }
 0x7f8   :  { %512 = vst.msk [vmem:[#allocation4] sm:$0x3] %vm34_vm2, %v510_v30  ;;  %v515_v32 = vrot.slane %v1757_v29, 7 }
 0x7fa   :  { %v516_v33 = vsel %vm237_vm4, %v515_v32, %v1760_v31 }
 0x7fb   :  { %517 = vrot.lane.b32.xlu0 %v516_v33, %s1589_s2 }
 0x7ff   :  { %v596_v50 = vld [vmem:[#allocation4] sm:$0x3] }
 0x800   :  { %v598_v51 = vrot.slane %v596_v50, 1 }
 0x86d   :  { %v518_v34 = vpop.permute.xlu0 %517 }
 0x86e   :  { %520 = vst.msk [vmem:[#allocation3] sm:$0x3] %vm34_vm2, %v518_v34  ;;  %v664_v34 = vld [vmem:[#allocation2 + $0xc] sm:$0x1] }
 0x875   :  { %v531_v35 = vld [vmem:[#allocation3] sm:$0x3] }
 0x876   :  { %v532_v36 = vpack.c.bf16 %v531_v35, %v531_v35 }
 0x878   :  { %1340 = vmatmul.mubr.msk.bf16.vlgmr.msra.gmra.mrb[8].mxu0 %vm127_vm3, %v532_v36 }
 0x879   :  { %1352 = vmatpush3.bf16.msra.mxu0 %v1655_v3  ;;  %1355 = vmatprep.mubr.msk.bf16.mxu0 %vm1588_vm0, %v1587_v1 }
 0x87a   :  { %1353 = vmatprep.subr.bf16.mxu0 %v1587_v1 }
 0x87d   :  { %1354 = vmatpush3.bf16.msra.mxu0 %v1664_v4 }
 0x87e   :  { %1367 = vmatprep.subr.bf16.mxu0 %v1587_v1 }
 0x94b   :  { %v570_v38 = vpop.f32.mrb[8].mxu0 }
 0x94c   :  { %v577_v39 = vrot.slane %v570_v38, 1  ;;  %v580_v40 = vadd.f32 %v570_v38, %v529_v37  ;;  %v1341_v42 = vpop.f32.mrb[9].mxu0 }
 0x94d   :  { %v573_v45 = vpop.f32.mrb[10].mxu0 }
 0x94e   :  { %v581_v46 = vadd.f32 %v577_v39, %v530_v44  ;;  %1437 = vtanh.f32 %v580_v40  ;;  %v1342_v47 = vpop.f32.mrb[11].mxu0  ;;  %v1265_v52 = vmul.f32 -1.442695, %v580_v40 }
 0x950   :  { %1439 = vtanh.f32 %v581_v46  ;;  %v1266_v53 = vmul.f32 -1.442695, %v581_v46 }
 0x951   :  { %1441 = vpow2.f32 %v1265_v52 }
 0x952   :  { %1443 = vpow2.f32 %v1266_v53 }
 0x958   :  { %v1438_v48 = vpop.eup %1437 }
 0x959   :  { %609 = vrot.lane.b32.xlu1 %v1438_v48, %s1590_s3 }
 0x95a   :  { %v1440_v49 = vpop.eup %1439 }
 0x95b   :  { %611 = vrot.lane.b32.xlu0 %v1440_v49, %s1590_s3  ;;  %v1442_v55 = vpop.eup %1441 }
 0x95c   :  { %v1444_v56 = vpop.eup %1443  ;;  %v588_v58 = vadd.f32 1.0, %v1442_v55 }
 0x95d   :  { %599 = vrot.lane.b32.xlu1 %v596_v50, %s1589_s2  ;;  %v589_v59 = vadd.f32 1.0, %v1444_v56 }
 0x95e   :  { %1445 = vrcp.f32 %v588_v58 }
 0x95f   :  { %601 = vrot.lane.b32.xlu0 %v598_v51, %s1589_s2  ;;  %1447 = vrcp.f32 %v589_v59 }
 0x968   :  { %v1446_v60 = vpop.eup %1445 }
 0x969   :  { %v1448_v63 = vpop.eup %1447 }
 0x9cb   :  { %v610_v61 = vpop.permute.xlu1 %609 }
 0x9cc   :  { %v615_v62 = vmul.f32 %v1446_v60, %v610_v61 }
 0x9cd   :  { %v612_v0 = vpop.permute.xlu0 %611 }
 0x9ce   :  { %619 = vrot.lane.b32.xlu1 %v615_v62, %s1589_s2  ;;  %v616_v2 = vmul.f32 %v1448_v63, %v612_v0 }
 0x9cf   :  { %v600_v5 = vpop.permute.xlu1 %599 }
 0x9d0   :  { %621 = vrot.lane.b32.xlu0 %v616_v2, %s1589_s2  ;;  %v605_v6 = vmul.f32 %v1446_v60, %v600_v5 }
 0x9d1   :  { %v602_v7 = vpop.permute.xlu0 %601 }
 0x9d2   :  { %v606_v10 = vmul.f32 %v1448_v63, %v602_v7 }
 0xa40   :  { %v620_v8 = vpop.permute.xlu1 %619 }
 0xa41   :  { %v625_v9 = vadd.f32 %v620_v8, %v605_v6 }
 0xa42   :  { %v622_v11 = vpop.permute.xlu0 %621 }
 0xa43   :  { %1449 = vtanh.f32 %v625_v9  ;;  %v626_v12 = vadd.f32 %v622_v11, %v606_v10 }
 0xa45   :  { %1451 = vtanh.f32 %v626_v12  ;;  %v641_v14 = vrot.slane %v626_v12, 7 }
 0xa47   :  { %v642_v16 = vsel %vm237_vm4, %v641_v14, %v625_v9 }
 0xa4d   :  { %v1450_v13 = vpop.eup %1449 }
 0xa4e   :  { %631 = vrot.lane.b32.xlu1 %v1450_v13, %s1590_s3 }
 0xa4f   :  { %v1452_v15 = vpop.eup %1451 }
 0xa50   :  { %633 = vrot.lane.b32.xlu0 %v1452_v15, %s1590_s3 }
 0xa52   :  { %643 = vrot.lane.b32.xlu1 %v642_v16, %s1591_s15 }
 0xac0   :  { %v632_v17 = vpop.permute.xlu1 %631 }
 0xac1   :  { %v1787_v21 = vmul.f32 %v1446_v60, %v632_v17 }
 0xac2   :  { %v634_v18 = vpop.permute.xlu0 %633 }
 0xac3   :  { %v1784_v19 = vmul.f32 %v1448_v63, %v634_v18 }
 0xac4   :  { %v644_v20 = vpop.permute.xlu1 %643 }
 0xac5   :  { %646 = vst.msk [vmem:[#allocation4] sm:$0x3] %vm34_vm2, %v644_v20  ;;  %v649_v22 = vrot.slane %v1784_v19, 7  ;;  %v797_v20 = vld [vmem:[#allocation2 + $0x5] sm:$0x1] }
 0xac7   :  { %v650_v23 = vsel %vm237_vm4, %v649_v22, %v1787_v21 }
 0xac8   :  { %651 = vrot.lane.b32.xlu0 %v650_v23, %s1589_s2 }
 0xacc   :  { %v730_v40 = vld [vmem:[#allocation4] sm:$0x3] }
 0xacd   :  { %v732_v42 = vrot.slane %v730_v40, 1 }
 0xb3a   :  { %v652_v24 = vpop.permute.xlu0 %651 }
 0xb3b   :  { %654 = vst.msk [vmem:[#allocation3] sm:$0x3] %vm34_vm2, %v652_v24 }
 0xb42   :  { %v665_v25 = vld [vmem:[#allocation3] sm:$0x3] }
 0xb43   :  { %v666_v26 = vpack.c.bf16 %v665_v25, %v665_v25 }
 0xb45   :  { %1348 = vmatmul.mubr.msk.bf16.vlgmr.msra.gmra.mrb[8].mxu1 %vm127_vm3, %v666_v26  ;;  %v798_v26 = vld [vmem:[#allocation2 + $0xd] sm:$0x1] }
 0xb46   :  { %1360 = vmatpush3.bf16.msra.mxu1 %v1655_v3  ;;  %1363 = vmatprep.mubr.msk.bf16.mxu1 %vm1588_vm0, %v1587_v1 }
 0xb47   :  { %1361 = vmatprep.subr.bf16.mxu1 %v1587_v1 }
 0xb4a   :  { %1362 = vmatpush3.bf16.msra.mxu1 %v1664_v4 }
 0xc18   :  { %v704_v28 = vpop.f32.mrb[8].mxu1 }
 0xc19   :  { %v711_v30 = vrot.slane %v704_v28, 1  ;;  %v714_v32 = vadd.f32 %v704_v28, %v663_v27  ;;  %v1349_v33 = vpop.f32.mrb[9].mxu1 }
 0xc1a   :  { %v707_v35 = vpop.f32.mrb[10].mxu1 }
 0xc1b   :  { %v715_v36 = vadd.f32 %v711_v30, %v664_v34  ;;  %1453 = vtanh.f32 %v714_v32  ;;  %v1350_v37 = vpop.f32.mrb[11].mxu1  ;;  %v1268_v44 = vmul.f32 -1.442695, %v714_v32 }
 0xc1d   :  { %1455 = vtanh.f32 %v715_v36  ;;  %v1269_v45 = vmul.f32 -1.442695, %v715_v36 }
 0xc1e   :  { %1457 = vpow2.f32 %v1268_v44 }
 0xc1f   :  { %1459 = vpow2.f32 %v1269_v45 }
 0xc25   :  { %v1454_v38 = vpop.eup %1453 }
 0xc26   :  { %743 = vrot.lane.b32.xlu1 %v1454_v38, %s1590_s3 }
 0xc27   :  { %v1456_v39 = vpop.eup %1455 }
 0xc28   :  { %745 = vrot.lane.b32.xlu0 %v1456_v39, %s1590_s3  ;;  %v1458_v46 = vpop.eup %1457 }
 0xc29   :  { %v1460_v47 = vpop.eup %1459  ;;  %v722_v48 = vadd.f32 1.0, %v1458_v46 }
 0xc2a   :  { %733 = vrot.lane.b32.xlu1 %v730_v40, %s1589_s2  ;;  %v723_v49 = vadd.f32 1.0, %v1460_v47 }
 0xc2b   :  { %1461 = vrcp.f32 %v722_v48 }
 0xc2c   :  { %735 = vrot.lane.b32.xlu0 %v732_v42, %s1589_s2  ;;  %1463 = vrcp.f32 %v723_v49 }
 0xc35   :  { %v1462_v50 = vpop.eup %1461 }
 0xc36   :  { %v1464_v53 = vpop.eup %1463 }
 0xc98   :  { %v744_v51 = vpop.permute.xlu1 %743 }
 0xc99   :  { %v749_v52 = vmul.f32 %v1462_v50, %v744_v51 }
 0xc9a   :  { %v746_v55 = vpop.permute.xlu0 %745 }
 0xc9b   :  { %753 = vrot.lane.b32.xlu1 %v749_v52, %s1589_s2  ;;  %v750_v56 = vmul.f32 %v1464_v53, %v746_v55 }
 0xc9c   :  { %v734_v58 = vpop.permute.xlu1 %733 }
 0xc9d   :  { %755 = vrot.lane.b32.xlu0 %v750_v56, %s1589_s2  ;;  %v739_v59 = vmul.f32 %v1462_v50, %v734_v58 }
 0xc9e   :  { %v736_v60 = vpop.permute.xlu0 %735 }
 0xc9f   :  { %v740_v63 = vmul.f32 %v1464_v53, %v736_v60 }
 0xd0d   :  { %v754_v61 = vpop.permute.xlu1 %753 }
 0xd0e   :  { %v759_v62 = vadd.f32 %v754_v61, %v739_v59 }
 0xd0f   :  { %v756_v0 = vpop.permute.xlu0 %755 }
 0xd10   :  { %1465 = vtanh.f32 %v759_v62  ;;  %v760_v2 = vadd.f32 %v756_v0, %v740_v63 }
 0xd12   :  { %1467 = vtanh.f32 %v760_v2  ;;  %v775_v6 = vrot.slane %v760_v2, 7 }
 0xd14   :  { %v776_v8 = vsel %vm237_vm4, %v775_v6, %v759_v62 }
 0xd1a   :  { %v1466_v5 = vpop.eup %1465 }
 0xd1b   :  { %765 = vrot.lane.b32.xlu1 %v1466_v5, %s1590_s3 }
 0xd1c   :  { %v1468_v7 = vpop.eup %1467 }
 0xd1d   :  { %767 = vrot.lane.b32.xlu0 %v1468_v7, %s1590_s3 }
 0xd1f   :  { %777 = vrot.lane.b32.xlu1 %v776_v8, %s1591_s15 }
 0xd8d   :  { %v766_v9 = vpop.permute.xlu1 %765 }
 0xd8e   :  { %v1813_v13 = vmul.f32 %v1462_v50, %v766_v9 }
 0xd8f   :  { %v768_v10 = vpop.permute.xlu0 %767 }
 0xd90   :  { %v1810_v11 = vmul.f32 %v1464_v53, %v768_v10  ;;  %v931_v10 = vld [vmem:[#allocation2 + $0x6] sm:$0x1] }
 0xd91   :  { %v778_v12 = vpop.permute.xlu1 %777 }
 0xd92   :  { %780 = vst.msk [vmem:[#allocation4] sm:$0x3] %vm34_vm2, %v778_v12  ;;  %v783_v14 = vrot.slane %v1810_v11, 7 }
 0xd94   :  { %v784_v15 = vsel %vm237_vm4, %v783_v14, %v1813_v13 }
 0xd95   :  { %785 = vrot.lane.b32.xlu0 %v784_v15, %s1589_s2 }
 0xd99   :  { %v864_v33 = vld [vmem:[#allocation4] sm:$0x3] }
 0xe07   :  { %v786_v16 = vpop.permute.xlu0 %785 }
 0xe08   :  { %788 = vst.msk [vmem:[#allocation3] sm:$0x3] %vm34_vm2, %v786_v16 }
 0xe0f   :  { %v799_v17 = vld [vmem:[#allocation3] sm:$0x3] }
 0xe10   :  { %v800_v18 = vpack.c.bf16 %v799_v17, %v799_v17  ;;  %v932_v17 = vld [vmem:[#allocation2 + $0xe] sm:$0x1] }
 0xe12   :  { %1356 = vmatmul.mubr.msk.bf16.vlgmr.msra.gmra.mrb[12].mxu0 %vm127_vm3, %v800_v18 }
 0xe13   :  { %1368 = vmatpush3.bf16.msra.mxu0 %v1655_v3  ;;  %1371 = vmatprep.mubr.msk.bf16.mxu0 %vm1588_vm0, %v1587_v1 }
 0xe14   :  { %1369 = vmatprep.subr.bf16.mxu0 %v1587_v1  ;;  %v866_v1 = vrot.slane %v864_v33, 1 }
 0xe17   :  { %1370 = vmatpush3.bf16.msra.mxu0 %v1664_v4 }
 0xee5   :  { %v838_v22 = vpop.f32.mrb[12].mxu0 }
 0xee6   :  { %v845_v23 = vrot.slane %v838_v22, 1  ;;  %v848_v24 = vadd.f32 %v838_v22, %v797_v20  ;;  %v1357_v25 = vpop.f32.mrb[13].mxu0 }
 0xee7   :  { %v841_v27 = vpop.f32.mrb[14].mxu0 }
 0xee8   :  { %v849_v28 = vadd.f32 %v845_v23, %v798_v26  ;;  %1469 = vtanh.f32 %v848_v24  ;;  %v1358_v30 = vpop.f32.mrb[15].mxu0  ;;  %v1271_v4 = vmul.f32 -1.442695, %v848_v24 }
 0xeea   :  { %1471 = vtanh.f32 %v849_v28  ;;  %v1272_v34 = vmul.f32 -1.442695, %v849_v28 }
 0xeeb   :  { %1473 = vpow2.f32 %v1271_v4 }
 0xeec   :  { %1475 = vpow2.f32 %v1272_v34 }
 0xef2   :  { %v1470_v32 = vpop.eup %1469 }
 0xef3   :  { %877 = vrot.lane.b32.xlu1 %v1470_v32, %s1590_s3 }
 0xef4   :  { %v1472_v3 = vpop.eup %1471 }
 0xef5   :  { %879 = vrot.lane.b32.xlu0 %v1472_v3, %s1590_s3  ;;  %v1474_v35 = vpop.eup %1473 }
 0xef6   :  { %v1476_v36 = vpop.eup %1475  ;;  %v856_v37 = vadd.f32 1.0, %v1474_v35 }
 0xef7   :  { %867 = vrot.lane.b32.xlu1 %v864_v33, %s1589_s2  ;;  %v857_v38 = vadd.f32 1.0, %v1476_v36 }
 0xef8   :  { %1477 = vrcp.f32 %v856_v37 }
 0xef9   :  { %869 = vrot.lane.b32.xlu0 %v866_v1, %s1589_s2  ;;  %1479 = vrcp.f32 %v857_v38 }
 0xf02   :  { %v1478_v39 = vpop.eup %1477 }
 0xf03   :  { %v1480_v44 = vpop.eup %1479 }
 0xf65   :  { %v878_v40 = vpop.permute.xlu1 %877 }
 0xf66   :  { %v883_v42 = vmul.f32 %v1478_v39, %v878_v40 }
 0xf67   :  { %v880_v45 = vpop.permute.xlu0 %879 }
 0xf68   :  { %887 = vrot.lane.b32.xlu1 %v883_v42, %s1589_s2  ;;  %v884_v46 = vmul.f32 %v1480_v44, %v880_v45 }
 0xf69   :  { %v868_v47 = vpop.permute.xlu1 %867 }
 0xf6a   :  { %889 = vrot.lane.b32.xlu0 %v884_v46, %s1589_s2  ;;  %v873_v48 = vmul.f32 %v1478_v39, %v868_v47 }
 0xf6b   :  { %v870_v49 = vpop.permute.xlu0 %869 }
 0xf6c   :  { %v874_v52 = vmul.f32 %v1480_v44, %v870_v49 }
 0xfda   :  { %v888_v50 = vpop.permute.xlu1 %887 }
 0xfdb   :  { %v893_v51 = vadd.f32 %v888_v50, %v873_v48 }
 0xfdc   :  { %v890_v53 = vpop.permute.xlu0 %889 }
 0xfdd   :  { %1481 = vtanh.f32 %v893_v51  ;;  %v894_v55 = vadd.f32 %v890_v53, %v874_v52 }
 0xfdf   :  { %1483 = vtanh.f32 %v894_v55  ;;  %v909_v58 = vrot.slane %v894_v55, 7 }
 0xfe1   :  { %v910_v60 = vsel %vm237_vm4, %v909_v58, %v893_v51 }
 0xfe7   :  { %v1482_v56 = vpop.eup %1481 }
 0xfe8   :  { %899 = vrot.lane.b32.xlu1 %v1482_v56, %s1590_s3 }
 0xfe9   :  { %v1484_v59 = vpop.eup %1483 }
 0xfea   :  { %901 = vrot.lane.b32.xlu0 %v1484_v59, %s1590_s3 }
 0xfec   :  { %911 = vrot.lane.b32.xlu1 %v910_v60, %s1591_s15 }
0x105a   :  { %v900_v61 = vpop.permute.xlu1 %899 }
0x105b   :  { %v1839_v2 = vmul.f32 %v1478_v39, %v900_v61 }
0x105c   :  { %v902_v62 = vpop.permute.xlu0 %901 }
0x105d   :  { %v1836_v63 = vmul.f32 %v1480_v44, %v902_v62 }
0x105e   :  { %v912_v0 = vpop.permute.xlu1 %911 }
0x105f   :  { %914 = vst.msk [vmem:[#allocation4] sm:$0x3] %vm34_vm2, %v912_v0  ;;  %v917_v5 = vrot.slane %v1836_v63, 7 }
0x1061   :  { %v918_v6 = vsel %vm237_vm4, %v917_v5, %v1839_v2  ;;  %v1065_v5 = vld [vmem:[#allocation2 + $0x7] sm:$0x1] }
0x1062   :  { %919 = vrot.lane.b32.xlu0 %v918_v6, %s1589_s2 }
0x1066   :  { %v998_v25 = vld [vmem:[#allocation4] sm:$0x3] }
0x1067   :  { %v1000_v26 = vrot.slane %v998_v25, 1 }
0x10d4   :  { %v920_v7 = vpop.permute.xlu0 %919 }
0x10d5   :  { %922 = vst.msk [vmem:[#allocation3] sm:$0x3] %vm34_vm2, %v920_v7 }
0x10dc   :  { %v933_v8 = vld [vmem:[#allocation3] sm:$0x3] }
0x10dd   :  { %v934_v9 = vpack.c.bf16 %v933_v8, %v933_v8 }
0x10df   :  { %1364 = vmatmul.mubr.msk.bf16.vlgmr.msra.gmra.mrb[12].mxu1 %vm127_vm3, %v934_v9 }
0x11b2   :  { %v972_v12 = vpop.f32.mrb[12].mxu1 }
0x11b3   :  { %v979_v14 = vrot.slane %v972_v12, 1  ;;  %v982_v15 = vadd.f32 %v972_v12, %v931_v10  ;;  %v1365_v16 = vpop.f32.mrb[13].mxu1  ;;  %v1066_v10 = vld [vmem:[#allocation2 + $0xf] sm:$0x1] }
0x11b4   :  { %v975_v18 = vpop.f32.mrb[14].mxu1 }
0x11b5   :  { %v983_v20 = vadd.f32 %v979_v14, %v932_v17  ;;  %1485 = vtanh.f32 %v982_v15  ;;  %v1366_v22 = vpop.f32.mrb[15].mxu1  ;;  %v1274_v27 = vmul.f32 -1.442695, %v982_v15 }
0x11b7   :  { %1487 = vtanh.f32 %v983_v20  ;;  %v1275_v28 = vmul.f32 -1.442695, %v983_v20 }
0x11b8   :  { %1489 = vpow2.f32 %v1274_v27 }
0x11b9   :  { %1491 = vpow2.f32 %v1275_v28 }
0x11bf   :  { %v1486_v23 = vpop.eup %1485 }
0x11c0   :  { %1011 = vrot.lane.b32.xlu1 %v1486_v23, %s1590_s3 }
0x11c1   :  { %v1488_v24 = vpop.eup %1487 }
0x11c2   :  { %1013 = vrot.lane.b32.xlu0 %v1488_v24, %s1590_s3  ;;  %v1490_v30 = vpop.eup %1489 }
0x11c3   :  { %v1492_v32 = vpop.eup %1491  ;;  %v990_v3 = vadd.f32 1.0, %v1490_v30 }
0x11c4   :  { %1001 = vrot.lane.b32.xlu1 %v998_v25, %s1589_s2  ;;  %v991_v33 = vadd.f32 1.0, %v1492_v32 }
0x11c5   :  { %1493 = vrcp.f32 %v990_v3 }
0x11c6   :  { %1003 = vrot.lane.b32.xlu0 %v1000_v26, %s1589_s2  ;;  %1495 = vrcp.f32 %v991_v33 }
0x11cf   :  { %v1494_v1 = vpop.eup %1493 }
0x11d0   :  { %v1496_v35 = vpop.eup %1495 }
0x1232   :  { %v1012_v4 = vpop.permute.xlu1 %1011 }
0x1233   :  { %v1017_v34 = vmul.f32 %v1494_v1, %v1012_v4 }
0x1234   :  { %v1014_v36 = vpop.permute.xlu0 %1013 }
0x1235   :  { %1021 = vrot.lane.b32.xlu1 %v1017_v34, %s1589_s2  ;;  %v1018_v37 = vmul.f32 %v1496_v35, %v1014_v36 }
0x1236   :  { %v1002_v38 = vpop.permute.xlu1 %1001 }
0x1237   :  { %1023 = vrot.lane.b32.xlu0 %v1018_v37, %s1589_s2  ;;  %v1007_v39 = vmul.f32 %v1494_v1, %v1002_v38 }
0x1238   :  { %v1004_v40 = vpop.permute.xlu0 %1003 }
0x1239   :  { %v1008_v45 = vmul.f32 %v1496_v35, %v1004_v40 }
0x12a7   :  { %v1022_v42 = vpop.permute.xlu1 %1021 }
0x12a8   :  { %v1027_v44 = vadd.f32 %v1022_v42, %v1007_v39 }
0x12a9   :  { %v1024_v46 = vpop.permute.xlu0 %1023 }
0x12aa   :  { %1497 = vtanh.f32 %v1027_v44  ;;  %v1028_v47 = vadd.f32 %v1024_v46, %v1008_v45 }
0x12ac   :  { %1499 = vtanh.f32 %v1028_v47  ;;  %v1043_v49 = vrot.slane %v1028_v47, 7 }
0x12ae   :  { %v1044_v51 = vsel %vm237_vm4, %v1043_v49, %v1027_v44 }
0x12b4   :  { %v1498_v48 = vpop.eup %1497 }
0x12b5   :  { %1033 = vrot.lane.b32.xlu1 %v1498_v48, %s1590_s3 }
0x12b6   :  { %v1500_v50 = vpop.eup %1499 }
0x12b7   :  { %1035 = vrot.lane.b32.xlu0 %v1500_v50, %s1590_s3 }
0x12b9   :  { %1045 = vrot.lane.b32.xlu1 %v1044_v51, %s1591_s15 }
0x1327   :  { %v1034_v52 = vpop.permute.xlu1 %1033 }
0x1328   :  { %v1860_v58 = vmul.f32 %v1494_v1, %v1034_v52 }
0x1329   :  { %v1036_v53 = vpop.permute.xlu0 %1035 }
0x132a   :  { %v1857_v55 = vmul.f32 %v1496_v35, %v1036_v53 }
0x132b   :  { %v1046_v56 = vpop.permute.xlu1 %1045 }
0x132c   :  { %1048 = vst.msk [vmem:[#allocation4] sm:$0x3] %vm34_vm2, %v1046_v56  ;;  %v1051_v59 = vrot.slane %v1857_v55, 7 }
0x132e   :  { %v1052_v60 = vsel %vm237_vm4, %v1051_v59, %v1860_v58 }
0x132f   :  { %1053 = vrot.lane.b32.xlu0 %v1052_v60, %s1589_s2 }
0x1333   :  { %v1132_v18 = vld [vmem:[#allocation4] sm:$0x3] }
0x1334   :  { %v1134_v20 = vrot.slane %v1132_v18, 1 }
0x13a1   :  { %v1054_v61 = vpop.permute.xlu0 %1053 }
0x13a2   :  { %1056 = vst.msk [vmem:[#allocation3] sm:$0x3] %vm34_vm2, %v1054_v61 }
0x13a9   :  { %v1067_v62 = vld [vmem:[#allocation3] sm:$0x3] }
0x13aa   :  { %v1068_v0 = vpack.c.bf16 %v1067_v62, %v1067_v62 }
0x13ac   :  { %1372 = vmatmul.mubr.msk.bf16.vlgmr.msra.gmra.mrb[16].mxu0 %vm127_vm3, %v1068_v0 }
0x147f   :  { %v1106_v6 = vpop.f32.mrb[16].mxu0 }
0x1480   :  { %v1113_v7 = vrot.slane %v1106_v6, 1  ;;  %v1116_v8 = vadd.f32 %v1106_v6, %v1065_v5  ;;  %v1373_v9 = vpop.f32.mrb[17].mxu0 }
0x1481   :  { %v1109_v12 = vpop.f32.mrb[18].mxu0 }
0x1482   :  { %v1117_v14 = vadd.f32 %v1113_v7, %v1066_v10  ;;  %1501 = vtanh.f32 %v1116_v8  ;;  %v1374_v15 = vpop.f32.mrb[19].mxu0  ;;  %v1277_v22 = vmul.f32 -1.442695, %v1116_v8 }
0x1484   :  { %1503 = vtanh.f32 %v1117_v14  ;;  %v1278_v23 = vmul.f32 -1.442695, %v1117_v14 }
0x1485   :  { %1505 = vpow2.f32 %v1277_v22 }
0x1486   :  { %1507 = vpow2.f32 %v1278_v23 }
0x148c   :  { %v1502_v16 = vpop.eup %1501 }
0x148d   :  { %1145 = vrot.lane.b32.xlu1 %v1502_v16, %s1590_s3 }
0x148e   :  { %v1504_v17 = vpop.eup %1503 }
0x148f   :  { %1147 = vrot.lane.b32.xlu0 %v1504_v17, %s1590_s3  ;;  %v1506_v24 = vpop.eup %1505 }
0x1490   :  { %v1508_v25 = vpop.eup %1507  ;;  %v1124_v26 = vadd.f32 1.0, %v1506_v24 }
0x1491   :  { %1135 = vrot.lane.b32.xlu1 %v1132_v18, %s1589_s2  ;;  %v1125_v27 = vadd.f32 1.0, %v1508_v25 }
0x1492   :  { %1509 = vrcp.f32 %v1124_v26 }
0x1493   :  { %1137 = vrot.lane.b32.xlu0 %v1134_v20, %s1589_s2  ;;  %1511 = vrcp.f32 %v1125_v27 }
0x149c   :  { %v1510_v28 = vpop.eup %1509 }
0x149d   :  { %v1512_v3 = vpop.eup %1511 }
0x14ff   :  { %v1146_v30 = vpop.permute.xlu1 %1145 }
0x1500   :  { %v1151_v32 = vmul.f32 %v1510_v28, %v1146_v30 }
0x1501   :  { %v1148_v33 = vpop.permute.xlu0 %1147 }
0x1502   :  { %1155 = vrot.lane.b32.xlu1 %v1151_v32, %s1589_s2  ;;  %v1152_v1 = vmul.f32 %v1512_v3, %v1148_v33 }
0x1503   :  { %v1136_v4 = vpop.permute.xlu1 %1135 }
0x1504   :  { %1157 = vrot.lane.b32.xlu0 %v1152_v1, %s1589_s2  ;;  %v1141_v34 = vmul.f32 %v1510_v28, %v1136_v4 }
0x1505   :  { %v1138_v35 = vpop.permute.xlu0 %1137 }
0x1506   :  { %v1142_v38 = vmul.f32 %v1512_v3, %v1138_v35 }
0x1574   :  { %v1156_v36 = vpop.permute.xlu1 %1155 }
0x1575   :  { %v1161_v37 = vadd.f32 %v1156_v36, %v1141_v34 }
0x1576   :  { %v1158_v39 = vpop.permute.xlu0 %1157 }
0x1577   :  { %1513 = vtanh.f32 %v1161_v37  ;;  %v1162_v40 = vadd.f32 %v1158_v39, %v1142_v38 }
0x1579   :  { %1515 = vtanh.f32 %v1162_v40  ;;  %v1177_v44 = vrot.slane %v1162_v40, 7 }
0x157b   :  { %v1178_v46 = vsel %vm237_vm4, %v1177_v44, %v1161_v37 }
0x1581   :  { %v1514_v42 = vpop.eup %1513 }
0x1582   :  { %1167 = vrot.lane.b32.xlu1 %v1514_v42, %s1590_s3 }
0x1583   :  { %v1516_v45 = vpop.eup %1515 }
0x1584   :  { %1169 = vrot.lane.b32.xlu0 %v1516_v45, %s1590_s3 }
0x1586   :  { %1179 = vrot.lane.b32.xlu1 %v1178_v46, %s1591_s15 }
0x1588   :  { %252 = vrot.lane.b32.xlu0 %v1706_v57, %s1589_s2 }
0x158a   :  { %254 = vrot.lane.b32.xlu1 %v1703_v54, %s1589_s2 }
0x158c   :  { %387 = vrot.lane.b32.xlu0 %v1733_v43, %s1589_s2 }
0x158e   :  { %389 = vrot.lane.b32.xlu1 %v1730_v41, %s1589_s2 }
0x1590   :  { %521 = vrot.lane.b32.xlu0 %v1760_v31, %s1589_s2 }
0x1592   :  { %523 = vrot.lane.b32.xlu1 %v1757_v29, %s1589_s2 }
0x1594   :  { %655 = vrot.lane.b32.xlu0 %v1787_v21, %s1589_s2 }
0x1596   :  { %657 = vrot.lane.b32.xlu1 %v1784_v19, %s1589_s2 }
0x1598   :  { %789 = vrot.lane.b32.xlu0 %v1813_v13, %s1589_s2 }
0x159a   :  { %791 = vrot.lane.b32.xlu1 %v1810_v11, %s1589_s2 }
0x159e   :  { %925 = vrot.lane.b32.xlu1 %v1836_v63, %s1589_s2 }
0x15a2   :  { %1059 = vrot.lane.b32.xlu1 %v1857_v55, %s1589_s2 }
0x15f4   :  { %v1168_v54 = vpop.permute.xlu1 %1167 }
0x15f5   :  { %v1173_v29 = vmul.f32 %v1510_v28, %v1168_v54 }
0x15f6   :  { %v1170_v57 = vpop.permute.xlu0 %1169 }
0x15f7   :  { %v1174_v41 = vmul.f32 %v1512_v3, %v1170_v57 }
0x15f8   :  { %v1180_v43 = vpop.permute.xlu1 %1179 }
0x15f9   :  { %1182 = vst.msk [vmem:[#allocation4] sm:$0x3] %vm34_vm2, %v1180_v43  ;;  %v1185_v31 = vrot.slane %v1174_v41, 7  ;;  %1193 = vrot.lane.b32.xlu1 %v1174_v41, %s1589_s2 }
0x15fa   :  { %v253_v19 = vpop.permute.xlu0 %252 }
0x15fb   :  { %259 = vst.msk [vmem:[#allocation5] sm:$0x1] %vm258_vm5, %v253_v19  ;;  %v1186_v11 = vsel %vm237_vm4, %v1185_v31, %v1173_v29 }
0x15fc   :  { %v255_v21 = vpop.permute.xlu1 %254  ;;  %1187 = vrot.lane.b32.xlu0 %v1186_v11, %s1589_s2 }
0x15fd   :  { %260 = vst.msk [vmem:[#allocation5 + $0x8] sm:$0x1] %vm258_vm5, %v255_v21 }
0x15fe   :  { %v388_v13 = vpop.permute.xlu0 %387 }
0x15ff   :  { %393 = vst.msk [vmem:[#allocation5 + $0x1] sm:$0x1] %vm258_vm5, %v388_v13 }
0x1600   :  { %v390_v63 = vpop.permute.xlu1 %389  ;;  %v1204_v47 = vld [vmem:[#allocation4] sm:$0x3]  ;;  %923 = vrot.lane.b32.xlu0 %v1839_v2, %s1589_s2 }
0x1601   :  { %394 = vst.msk [vmem:[#allocation5 + $0x9] sm:$0x1] %vm258_vm5, %v390_v63 }
0x1602   :  { %1205 = vst.msk [vmem:[#allocation9] sm:$0x3] %vm34_vm2, %v1204_v47  ;;  %v522_v48 = vpop.permute.xlu0 %521 }
0x1603   :  { %527 = vst.msk [vmem:[#allocation5 + $0x2] sm:$0x1] %vm258_vm5, %v522_v48 }
0x1604   :  { %v524_v49 = vpop.permute.xlu1 %523  ;;  %1057 = vrot.lane.b32.xlu0 %v1860_v58, %s1589_s2 }
0x1605   :  { %528 = vst.msk [vmem:[#allocation5 + $0xa] sm:$0x1] %vm258_vm5, %v524_v49 }
0x1606   :  { %v656_v50 = vpop.permute.xlu0 %655 }
0x1607   :  { %661 = vst.msk [vmem:[#allocation5 + $0x3] sm:$0x1] %vm258_vm5, %v656_v50 }
0x1608   :  { %v658_v51 = vpop.permute.xlu1 %657  ;;  %1191 = vrot.lane.b32.xlu0 %v1173_v29, %s1589_s2 }
0x1609   :  { %662 = vst.msk [vmem:[#allocation5 + $0xb] sm:$0x1] %vm258_vm5, %v658_v51 }
0x160a   :  { %v790_v2 = vpop.permute.xlu0 %789 }
0x160b   :  { %795 = vst.msk [vmem:[#allocation5 + $0x4] sm:$0x1] %vm258_vm5, %v790_v2 }
0x160c   :  { %v792_v52 = vpop.permute.xlu1 %791 }
0x160d   :  { %796 = vst.msk [vmem:[#allocation5 + $0xc] sm:$0x1] %vm258_vm5, %v792_v52 }
0x1610   :  { %v926_v53 = vpop.permute.xlu1 %925 }
0x1611   :  { %930 = vst.msk [vmem:[#allocation5 + $0xd] sm:$0x1] %vm258_vm5, %v926_v53 }
0x1614   :  { %v1060_v55 = vpop.permute.xlu1 %1059 }
0x1615   :  { %1064 = vst.msk [vmem:[#allocation5 + $0xe] sm:$0x1] %vm258_vm5, %v1060_v55 }
0x166b   :  { %v1194_v56 = vpop.permute.xlu1 %1193 }
0x166c   :  { %1198 = vst.msk [vmem:[#allocation5 + $0xf] sm:$0x1] %vm258_vm5, %v1194_v56 }
0x166e   :  { %v1188_v58 = vpop.permute.xlu0 %1187 }
0x166f   :  { %1190 = vst.msk [vmem:[#allocation3] sm:$0x3] %vm34_vm2, %v1188_v58 }
0x1672   :  { %v924_v59 = vpop.permute.xlu0 %923 }
0x1673   :  { %929 = vst.msk [vmem:[#allocation5 + $0x5] sm:$0x1] %vm258_vm5, %v924_v59 }
0x1676   :  { %v1058_v60 = vpop.permute.xlu0 %1057  ;;  %v1202_v61 = vld [vmem:[#allocation3] sm:$0x3] }
0x1677   :  { %1063 = vst.msk [vmem:[#allocation5 + $0x6] sm:$0x1] %vm258_vm5, %v1058_v60 }
0x1678   :  { %1203 = vst.msk [vmem:[#allocation7] sm:$0x3] %vm34_vm2, %v1202_v61 }
0x1679   :  { %1528 = shalt.err (!%p1525_p4)
}
0x167a   :  { %s1529_s25 = scalar_lea.hbm %s1980_s7, 32 }
0x167b   :  { %p1530_p5 = scmp.ne.s32.totalorder %s1980_s7, %s1529_s25  ;;  %p1533_p6 = scmp.lt.u32.totalorder %s1529_s25, %s1980_s7 }
0x167d   :  { %p1535_p7 = pnand %p1533_p6, %p1530_p5 }
0x167f   :  { %1538 = shalt.err (!%p1535_p7)
}
0x1680   :  { %1227 = dma.vmem_to_hbm [thread:$0]  %s1225_s17, 32, %s1980_s7, [#allocation8]  }
0x1681   :  { %s1539_s10 = scalar_lea.vmem %s1235_s21, 32  ;;  %p1544_p9 = scmp.lt.s32.totalorder %s1235_s21, %s1235_s21 }
0x1682   :  { %p1540_p8 = scmp.ne.s32.totalorder %s1235_s21, %s1539_s10  ;;  %p1545_p10 = scmp.lt.s32.totalorder %s1539_s10, %s1539_s10 }
0x1684   :  { %p1546_p11 = por %p1545_p10, %p1544_p9 }
0x1686   :  { %p1547_p12 = pnand %p1546_p11, %p1540_p8 }
0x1688   :  { %1550 = shalt.err (!%p1547_p12)
}
0x1689   :  { %s1551_s11 = scalar_lea.hbm %s1981_s8, 32 }
0x168a   :  { %p1552_p13 = scmp.ne.s32.totalorder %s1981_s8, %s1551_s11  ;;  %p1555_p0 = scmp.lt.u32.totalorder %s1551_s11, %s1981_s8 }
0x168c   :  { %p1557_p1 = pnand %p1555_p0, %p1552_p13 }
0x168e   :  { %1560 = shalt.err (!%p1557_p1)
}
0x168f   :  { %1237 = dma.vmem_to_hbm [thread:$0]  %s1235_s21, 32, %s1981_s8, [#allocation8]   ;;  %v1192_v62 = vpop.permute.xlu0 %1191 }
0x1690   :  { %1197 = vst.msk [vmem:[#allocation5 + $0x7] sm:$0x1] %vm258_vm5, %v1192_v62  ;;  %s1561_s5 = scalar_lea.vmem %s1927_s19, 256  ;;  %p1566_p3 = scmp.lt.s32.totalorder %s1927_s19, %s1927_s19 }
0x1691   :  { %p1562_p2 = scmp.ne.s32.totalorder %s1927_s19, %s1561_s5  ;;  %p1567_p4 = scmp.lt.s32.totalorder %s1561_s5, %s1561_s5 }
0x1693   :  { %p1568_p5 = por %p1567_p4, %p1566_p3 }
0x1695   :  { %p1569_p6 = pnand %p1568_p5, %p1562_p2 }
0x1697   :  { %1572 = shalt.err (!%p1569_p6)
}
0x1698   :  { %s1573_s16 = scalar_lea.hbm %s1979_s6, 256 }
0x1699   :  { %p1574_p7 = scmp.ne.s32.totalorder %s1979_s6, %s1573_s16  ;;  %p1577_p8 = scmp.lt.u32.totalorder %s1573_s16, %s1979_s6 }
0x169b   :  { %p1579_p9 = pnand %p1577_p8, %p1574_p7 }
0x169d   :  { %1582 = shalt.err (!%p1579_p9)
}
0x169e   :  { %s1595_s21 = smov 128   ;;  %s1596_s22 = smov 8  }
0x169f   :  { %1217 = dma.vmem_to_hbm [thread:$0]  %s1927_s19, 256, %s1979_s6, [#allocation6], %s1595_s21, %s1595_s21, %s1596_s22  }
0x16a0   :  { %1583 = dma.done.wait [#allocation6], 256  }
0x16a1   :  { %1584 = vsyncadd [#allocation6], 4294967040 }
0x16a2   :  { %1585 = dma.done.wait [#allocation8], 64  }
0x16a3   :  { %1586 = vsyncadd [#allocation8], 4294967232 }
0x16a4   :  { %1247 = vsyncpa [#allocation6], 1 }
0x16a5   :  { %1248 = vsyncpa [#allocation8], 1 }

</bundles_post_ra>
